<compile_context>
chip_gen: v7x
topology: tpu7x:2x2x1
jax: 0.10.0
libtpu: 0.0.40
codegen_flags: <defaults>
</compile_context>

<pallas_src>
import functools

import jax
import jax.numpy as jnp
import numpy as np
from jax import lax
from jax.experimental import pallas as pl
from jax.experimental.pallas import tpu as pltpu


PARAM_ORDER = (
    "ln1_w", "ln1_b",
    "wq", "bq", "wkv", "bkv", "wo", "bo",
    "ln2_w", "ln2_b",
    "w1", "b1", "w2", "b2",
)


def _layer_norm(x, w, b, eps=1e-5):
    mu = jnp.mean(x, axis=-1, keepdims=True)
    var = jnp.mean((x - mu) ** 2, axis=-1, keepdims=True)
    return (x - mu) * lax.rsqrt(var + eps) * w + b


def transformer_rpe_layer_kernel(
    src_ref, kbias_ref, keep_ref,
    ln1_w_ref, ln1_b_ref,
    wq_ref, bq_ref, wkv_ref, bkv_ref, wo_ref, bo_ref,
    ln2_w_ref, ln2_b_ref,
    w1_ref, b1_ref, w2_ref, b2_ref,
    out_ref,
    kv_ref, ctx_ref,
    *, n_head: int, d_head: int, q_tile: int,
):
    """One TransformerRPE layer for one (batch, query-tile) grid step.

    src_ref  : (1, S, D) full (padded) sequence, f32 — DMA'd once per batch.
    kbias_ref: (1, 1, S) additive key mask (-1e30 where key is padding), f32.
    keep_ref : (1, TQ, 1) keep column for the final zeroing, f32.
    kv_ref   : (S, 2D) bf16 scratch — cached K|V projection (per batch elem).
    ctx_ref  : (TQ, D) f32 scratch — per-head contexts packed along lanes.
    Matmul weights are bf16; biases / layernorm params are f32.
    """
    f32, bf16 = jnp.float32, jnp.bfloat16
    D = n_head * d_head
    scale = 1.0 / float(d_head) ** 0.5
    qi = pl.program_id(1)

    ln1_w, ln1_b = ln1_w_ref[...], ln1_b_ref[...]

    # ---- norm1 + fused K|V projection of the whole sequence: once per batch.
    @pl.when(qi == 0)
    def _():
        kv_in = _layer_norm(src_ref[0], ln1_w, ln1_b)                 # (S, D)
        kv = jnp.dot(kv_in.astype(bf16), wkv_ref[...],
                     preferred_element_type=f32) + bkv_ref[...]       # (S, 2D)
        kv_ref[...] = kv.astype(bf16)

    # ---- query tile (sliced from the resident full-sequence block) ----
    start = pl.multiple_of(qi * q_tile, q_tile)
    xq = src_ref[0, pl.ds(start, q_tile), :]                          # (TQ, D)
    kbias = kbias_ref[0]                                              # (1, S)
    keep = keep_ref[0]                                                # (TQ, 1)

    q_in = _layer_norm(xq, ln1_w, ln1_b)
    q = jnp.dot(q_in.astype(bf16), wq_ref[...],
                preferred_element_type=f32) + bq_ref[...]             # (TQ, D)
    q_bf = q.astype(bf16)

    # ---- per-head attention; contexts packed into lane slices of ctx_ref so
    #      the Wo projection below is a single (TQ,D)x(D,D) matmul.
    for h in range(n_head):
        sl = slice(h * d_head, (h + 1) * d_head)
        k_h = kv_ref[:, sl]                                           # (S, dh)
        v_h = kv_ref[:, D + h * d_head: D + (h + 1) * d_head]         # (S, dh)
        s = lax.dot_general(q_bf[:, sl], k_h,
                            dimension_numbers=(((1,), (1,)), ((), ())),
                            preferred_element_type=f32) * scale + kbias
        m = jnp.max(s, axis=-1, keepdims=True)
        p = jnp.exp(s - m)
        p = p * pl.reciprocal(jnp.sum(p, axis=-1, keepdims=True), approx=True)
        ctx_ref[:, sl] = jnp.dot(p.astype(bf16), v_h,
                                 preferred_element_type=f32)          # (TQ, dh)

    attn = jnp.dot(ctx_ref[...].astype(bf16), wo_ref[...],
                   preferred_element_type=f32) + bo_ref[...]          # (TQ, D)
    x = xq + attn                                                     # residual 1

    # ---- feed-forward (relu) ----
    x2 = _layer_norm(x, ln2_w_ref[...], ln2_b_ref[...])
    h1 = jnp.maximum(
        jnp.dot(x2.astype(bf16), w1_ref[...],
                preferred_element_type=f32) + b1_ref[...], 0.0)       # (TQ, FF)
    h2 = jnp.dot(h1.astype(bf16), w2_ref[...],
                 preferred_element_type=f32) + b2_ref[...]            # (TQ, D)
    x = x + h2                                                        # residual 2

    # ---- src.masked_fill_(src_padding_mask.unsqueeze(-1), 0.0) ----
    out_ref[0] = x * keep


def prep_layer_params(p, n_head):
    """Host-side fusion / dtype prep: K|V fused along lanes, bf16 matrices."""
    del n_head
    f32, bf16 = jnp.float32, jnp.bfloat16
    return {
        "ln1_w": p["ln1_w"].astype(f32),
        "ln1_b": p["ln1_b"].astype(f32),
        "wq": p["wq"].astype(bf16),
        "bq": p["bq"].astype(f32),
        "wkv": jnp.concatenate([p["wk"], p["wv"]], axis=1).astype(bf16),
        "bkv": jnp.concatenate([p["bk"], p["bv"]], axis=1).astype(f32),
        "wo": p["wo"].astype(bf16),
        "bo": p["bo"].astype(f32),
        "ln2_w": p["ln2_w"].astype(f32),
        "ln2_b": p["ln2_b"].astype(f32),
        "w1": p["w1"].astype(bf16),
        "b1": p["b1"].astype(f32),
        "w2": p["w2"].astype(bf16),
        "b2": p["b2"].astype(f32),
    }


def _default_q_tile(S):
    # 256-aligned M tiles fill the v6e/v7x 256-wide MXU and are 128-multiples
    # for v5e; small sequences use a single sublane-aligned tile.
    if S <= 256:
        return ((S + 7) // 8) * 8
    return 256


def _vmem_limit_bytes(S, TQ, D, FF, flat):
    weight_bytes = sum(int(np.prod(w.shape)) * w.dtype.itemsize for w in flat)
    # double-buffered f32 activation blocks: full-seq src, key bias, keep, out
    block_bytes = 2 * 4 * (S * D + S + TQ + TQ * D)
    # persistent scratch: bf16 K|V cache + f32 per-tile contexts
    scratch_bytes = 2 * (S * 2 * D) + 4 * (TQ * D)
    # transient f32 intermediates: normed seq, f32 kv, scores/probs, ffn, misc
    inter_bytes = 4 * (3 * S * D + 2 * TQ * S + TQ * FF + 8 * TQ * D)
    total = 2 * weight_bytes + block_bytes + scratch_bytes + inter_bytes + (4 << 20)
    try:
        cap = int(pltpu.get_tpu_info().vmem_capacity_bytes)
    except Exception:  # HW query unavailable at trace time -> assume 128 MiB
        cap = 128 << 20
    # ~3/4 of physical VMEM: ~48 MiB on v7x (64 MiB/TC), ~96 MiB on v5e/v6e.
    return int(min(max(total, 32 << 20), (cap * 3) // 4))


def _run_one_layer(src, key_bias, keep_col, params, n_head, q_tile, vmem_limit):
    B, S, D = src.shape
    dh = D // n_head
    flat = [params[name] for name in PARAM_ORDER]
    n_qt = S // q_tile

    full_map = lambda b, qi: (b, 0, 0)     # whole-sequence blocks (per batch)
    tile_map = lambda b, qi: (b, qi, 0)    # per (batch, query-tile) blocks

    def const_map(ndim):
        return lambda b, qi: (0,) * ndim   # weights: constant across the grid

    kernel = functools.partial(transformer_rpe_layer_kernel,
                               n_head=n_head, d_head=dh, q_tile=q_tile)

    in_specs = [
        pl.BlockSpec((1, S, D), full_map),        # src (fetched once per batch)
        pl.BlockSpec((1, 1, S), full_map),        # additive key-padding bias
        pl.BlockSpec((1, q_tile, 1), tile_map),   # keep column (final zeroing)
    ] + [pl.BlockSpec(w.shape, const_map(w.ndim)) for w in flat]

    return pl.pallas_call(
        kernel,
        out_shape=jax.ShapeDtypeStruct((B, S, D), jnp.float32),
        grid=(B, n_qt),
        in_specs=in_specs,
        out_specs=pl.BlockSpec((1, q_tile, D), tile_map),
        scratch_shapes=[
            pltpu.VMEM((S, 2 * D), jnp.bfloat16),    # cached K|V projection
            pltpu.VMEM((q_tile, D), jnp.float32),    # packed head contexts
        ],
        compiler_params=pltpu.CompilerParams(
            dimension_semantics=("parallel", "arbitrary"),
            vmem_limit_bytes=vmem_limit),
    )(src, key_bias, keep_col, *flat)


def transformer_block_rpe_forward(src, src_padding_mask, params_list, n_head,
                                  q_tile=None):
    """TransformerBlockRPE.forward for mode='enc_self_attn', tgt=None."""
    B, S, D = src.shape
    assert D % n_head == 0, "d_model must be divisible by n_head"
    if q_tile is None:
        q_tile = _default_q_tile(S)
    q_tile = max(8, (q_tile // 8) * 8)                # sublane-aligned tiles
    S_pad = ((S + q_tile - 1) // q_tile) * q_tile
    pad = S_pad - S

    x = src.astype(jnp.float32)
    mask = src_padding_mask
    if pad:
        # Padded keys are neutralized by the additive bias; padded rows are
        # zeroed by the keep column each layer, so padding is inert.
        x = jnp.pad(x, ((0, 0), (0, pad), (0, 0)))
        mask = jnp.pad(mask, ((0, 0), (0, pad)), constant_values=True)
    mask_f = mask.astype(jnp.float32)
    key_bias = (mask_f * jnp.float32(-1e30))[:, None, :]        # (B, 1, S_pad)
    keep_col = (1.0 - mask_f)[:, :, None]                       # (B, S_pad, 1)

    FF = params_list[0]["w1"].shape[1]
    flat0 = [params_list[0][name] for name in PARAM_ORDER]
    vmem_limit = _vmem_limit_bytes(S_pad, q_tile, D, FF, flat0)

    for params in params_list:
        x = _run_one_layer(x, key_bias, keep_col, params, n_head, q_tile,
                           vmem_limit)
    return x[:, :S] if pad else x


def init_params(key, d_model, k_feedforward):
    """PyTorch-layout parameters (f32) for one TransformerRPE layer."""
    ff = k_feedforward * d_model
    ks = jax.random.split(key, 10)
    w = lambda k, shape: jax.random.normal(k, shape, jnp.float32) * 0.02
    return {
        "ln1_w": jnp.ones((1, d_model), jnp.float32),
        "ln1_b": jnp.zeros((1, d_model), jnp.float32),
        "wq": w(ks[0], (d_model, d_model)),
        "bq": w(ks[1], (1, d_model)),
        "wk": w(ks[2], (d_model, d_model)),
        "bk": w(ks[3], (1, d_model)),
        "wv": w(ks[4], (d_model, d_model)),
        "bv": w(ks[5], (1, d_model)),
        "wo": w(ks[6], (d_model, d_model)),
        "bo": w(ks[7], (1, d_model)),
        "ln2_w": jnp.ones((1, d_model), jnp.float32),
        "ln2_b": jnp.zeros((1, d_model), jnp.float32),
        "w1": w(ks[8], (d_model, ff)),
        "b1": jnp.zeros((1, ff), jnp.float32),
        "w2": w(ks[9], (ff, d_model)),
        "b2": jnp.zeros((1, d_model), jnp.float32),
    }


def reference_forward(src, src_padding_mask, params_list, n_head):
    """Pure-JAX f32 reference mirroring the PyTorch module semantics."""
    def ln(x, w, b):
        mu = x.mean(-1, keepdims=True)
        var = ((x - mu) ** 2).mean(-1, keepdims=True)
        return (x - mu) / jnp.sqrt(var + 1e-5) * w[0] + b[0]

    B, S, D = src.shape
    dh = D // n_head
    mf = src_padding_mask.astype(jnp.float32)
    x = src
    for p in params_list:
        x2 = ln(x, p["ln1_w"], p["ln1_b"])
        q = x2 @ p["wq"] + p["bq"][0]
        k = x2 @ p["wk"] + p["bk"][0]
        v = x2 @ p["wv"] + p["bv"][0]
        qh = q.reshape(B, S, n_head, dh).transpose(0, 2, 1, 3)
        kh = k.reshape(B, S, n_head, dh).transpose(0, 2, 1, 3)
        vh = v.reshape(B, S, n_head, dh).transpose(0, 2, 1, 3)
        s = jnp.einsum("bhqd,bhkd->bhqk", qh, kh) / jnp.sqrt(dh)
        s = s + (mf * -1e30)[:, None, None, :]
        a = jax.nn.softmax(s, axis=-1)
        o = jnp.einsum("bhqk,bhkd->bhqd", a, vh).transpose(0, 2, 1, 3).reshape(B, S, D)
        o = o @ p["wo"] + p["bo"][0]
        x = x + o
        x2 = ln(x, p["ln2_w"], p["ln2_b"])
        h1 = jax.nn.relu(x2 @ p["w1"] + p["b1"][0])
        h2 = h1 @ p["w2"] + p["b2"][0]
        x = x + h2
        x = x * (1.0 - mf)[:, :, None]
    return x


if __name__ == "__main__":
    # Small shapes consistent with the module: batch=2, n_src=16, d_model=32,
    # n_head=4, k_feedforward=4, n_layer=1.  q_tile=8 -> grid (2, 2).
    B, S, D, H, KFF, N_LAYER = 2, 16, 32, 4, 4, 1
    Q_TILE = 8

    key = jax.random.PRNGKey(0)
    k_src, k_par = jax.random.split(key)

    src = jax.random.normal(k_src, (B, S, D), jnp.float32)
    # src_padding_mask: True == invalid. Pad the last 3 positions of batch 1.
    src_padding_mask = jnp.zeros((B, S), dtype=jnp.bool_).at[1, S - 3:].set(True)

    layer_keys = jax.random.split(k_par, N_LAYER)
    raw_params = [init_params(k, D, KFF) for k in layer_keys]
    kernel_params = [prep_layer_params(p, H) for p in raw_params]

    fwd = jax.jit(functools.partial(transformer_block_rpe_forward,
                                    n_head=H, q_tile=Q_TILE))
    out = jax.block_until_ready(fwd(src, src_padding_mask, kernel_params))

    ref = reference_forward(src, src_padding_mask, raw_params, H)
    np.testing.assert_allclose(np.asarray(out), np.asarray(ref),
                               atol=2e-2, rtol=2e-2)
    print("KERNEL_OK")
</pallas_src>

<mosaic_0001>
module attributes {stable_mosaic.version = 11 : i64} {
  func.func @transformer_rpe_layer_kernel(%arg0: i32, %arg1: i32, %arg2: memref<1x16x32xf32, #tpu.memory_space<vmem>>, %arg3: memref<1x1x16xf32, #tpu.memory_space<vmem>>, %arg4: memref<1x8x1xf32, #tpu.memory_space<vmem>>, %arg5: memref<1x32xf32, #tpu.memory_space<vmem>>, %arg6: memref<1x32xf32, #tpu.memory_space<vmem>>, %arg7: memref<32x32xbf16, #tpu.memory_space<vmem>>, %arg8: memref<1x32xf32, #tpu.memory_space<vmem>>, %arg9: memref<32x64xbf16, #tpu.memory_space<vmem>>, %arg10: memref<1x64xf32, #tpu.memory_space<vmem>>, %arg11: memref<32x32xbf16, #tpu.memory_space<vmem>>, %arg12: memref<1x32xf32, #tpu.memory_space<vmem>>, %arg13: memref<1x32xf32, #tpu.memory_space<vmem>>, %arg14: memref<1x32xf32, #tpu.memory_space<vmem>>, %arg15: memref<32x128xbf16, #tpu.memory_space<vmem>>, %arg16: memref<1x128xf32, #tpu.memory_space<vmem>>, %arg17: memref<128x32xbf16, #tpu.memory_space<vmem>>, %arg18: memref<1x32xf32, #tpu.memory_space<vmem>>, %arg19: memref<1x8x32xf32, #tpu.memory_space<vmem>>, %arg20: memref<16x64xbf16, #tpu.memory_space<vmem>>, %arg21: memref<8x32xf32, #tpu.memory_space<vmem>>) attributes {dimension_semantics = [#tpu.dimension_semantics<parallel>, #tpu.dimension_semantics<arbitrary>], iteration_bounds = array<i64: 2, 2>, scalar_prefetch = 0 : i64, scratch_operands = 2 : i64, tpu.core_type = #tpu.core_type<tc>, window_params = [{transform_indices = @transform_0, window_bounds = array<i64: 1, 16, 32>}, {transform_indices = @transform_1, window_bounds = array<i64: 1, 1, 16>}, {transform_indices = @transform_2, window_bounds = array<i64: 1, 8, 1>}, {pipeline_mode = #tpu.pipeline_mode<synchronous>, transform_indices = @transform_3, window_bounds = array<i64: 1, 32>}, {pipeline_mode = #tpu.pipeline_mode<synchronous>, transform_indices = @transform_4, window_bounds = array<i64: 1, 32>}, {pipeline_mode = #tpu.pipeline_mode<synchronous>, transform_indices = @transform_5, window_bounds = array<i64: 32, 32>}, {pipeline_mode = #tpu.pipeline_mode<synchronous>, transform_indices = @transform_6, window_bounds = array<i64: 1, 32>}, {pipeline_mode = #tpu.pipeline_mode<synchronous>, transform_indices = @transform_7, window_bounds = array<i64: 32, 64>}, {pipeline_mode = #tpu.pipeline_mode<synchronous>, transform_indices = @transform_8, window_bounds = array<i64: 1, 64>}, {pipeline_mode = #tpu.pipeline_mode<synchronous>, transform_indices = @transform_9, window_bounds = array<i64: 32, 32>}, {pipeline_mode = #tpu.pipeline_mode<synchronous>, transform_indices = @transform_10, window_bounds = array<i64: 1, 32>}, {pipeline_mode = #tpu.pipeline_mode<synchronous>, transform_indices = @transform_11, window_bounds = array<i64: 1, 32>}, {pipeline_mode = #tpu.pipeline_mode<synchronous>, transform_indices = @transform_12, window_bounds = array<i64: 1, 32>}, {pipeline_mode = #tpu.pipeline_mode<synchronous>, transform_indices = @transform_13, window_bounds = array<i64: 32, 128>}, {pipeline_mode = #tpu.pipeline_mode<synchronous>, transform_indices = @transform_14, window_bounds = array<i64: 1, 128>}, {pipeline_mode = #tpu.pipeline_mode<synchronous>, transform_indices = @transform_15, window_bounds = array<i64: 128, 32>}, {pipeline_mode = #tpu.pipeline_mode<synchronous>, transform_indices = @transform_16, window_bounds = array<i64: 1, 32>}, {transform_indices = @transform_17, window_bounds = array<i64: 1, 8, 32>}]} {
    %c0 = arith.constant 0 : index
    %c0_0 = arith.constant 0 : index
    %0 = vector.load %arg5[%c0, %c0_0] : memref<1x32xf32, #tpu.memory_space<vmem>>, vector<1x32xf32>
    %c0_1 = arith.constant 0 : index
    %c0_2 = arith.constant 0 : index
    %1 = vector.load %arg6[%c0_1, %c0_2] : memref<1x32xf32, #tpu.memory_space<vmem>>, vector<1x32xf32>
    %c0_i32 = arith.constant 0 : i32
    %2 = arith.cmpi eq, %arg1, %c0_i32 : i32
    %3 = arith.extui %2 : i1 to i32
    %c0_i32_3 = arith.constant 0 : i32
    %4 = arith.cmpi ne, %3, %c0_i32_3 : i32
    scf.if %4 {
      %c0_88 = arith.constant 0 : index
      %c0_89 = arith.constant 0 : index
      %c0_90 = arith.constant 0 : index
      %179 = vector.load %arg2[%c0_88, %c0_89, %c0_90] : memref<1x16x32xf32, #tpu.memory_space<vmem>>, vector<1x16x32xf32>
      %180 = vector.shape_cast %179 : vector<1x16x32xf32> to vector<16x32xf32>
      %cst_91 = arith.constant dense<0.000000e+00> : vector<16xf32>
      %181 = vector.multi_reduction <add>, %180, %cst_91 [1] : vector<16x32xf32> to vector<16xf32>
      %182 = vector.shape_cast %181 : vector<16xf32> to vector<16x1xf32>
      %cst_92 = arith.constant 3.200000e+01 : f32
      %183 = vector.broadcast %cst_92 : f32 to vector<16x1xf32>
      %184 = arith.divf %182, %183 : vector<16x1xf32>
      %185 = vector.broadcast %184 : vector<16x1xf32> to vector<16x32xf32>
      %186 = arith.subf %180, %185 : vector<16x32xf32>
      %187 = arith.mulf %186, %186 : vector<16x32xf32>
      %cst_93 = arith.constant dense<0.000000e+00> : vector<16xf32>
      %188 = vector.multi_reduction <add>, %187, %cst_93 [1] : vector<16x32xf32> to vector<16xf32>
      %189 = vector.shape_cast %188 : vector<16xf32> to vector<16x1xf32>
      %cst_94 = arith.constant 3.200000e+01 : f32
      %190 = vector.broadcast %cst_94 : f32 to vector<16x1xf32>
      %191 = arith.divf %189, %190 : vector<16x1xf32>
      %192 = vector.broadcast %184 : vector<16x1xf32> to vector<16x32xf32>
      %193 = arith.subf %180, %192 : vector<16x32xf32>
      %cst_95 = arith.constant 9.99999974E-6 : f32
      %194 = vector.broadcast %cst_95 : f32 to vector<16x1xf32>
      %195 = arith.addf %191, %194 : vector<16x1xf32>
      %196 = math.rsqrt %195 : vector<16x1xf32>
      %197 = vector.broadcast %196 : vector<16x1xf32> to vector<16x32xf32>
      %198 = arith.mulf %193, %197 : vector<16x32xf32>
      %199 = vector.broadcast %0 : vector<1x32xf32> to vector<16x32xf32>
      %200 = arith.mulf %198, %199 : vector<16x32xf32>
      %201 = vector.broadcast %1 : vector<1x32xf32> to vector<16x32xf32>
      %202 = arith.addf %200, %201 : vector<16x32xf32>
      %203 = arith.truncf %202 : vector<16x32xf32> to vector<16x32xbf16>
      %c0_96 = arith.constant 0 : index
      %c0_97 = arith.constant 0 : index
      %204 = vector.load %arg9[%c0_96, %c0_97] : memref<32x64xbf16, #tpu.memory_space<vmem>>, vector<32x64xbf16>
      %cst_98 = arith.constant dense<0.000000e+00> : vector<16x64xf32>
      %205 = tpu.matmul %203, %204, %cst_98 {dimension_numbers = #tpu.dot_dimension_numbers<[1], [0], [0], [1], [0, 0, 1, 1], [], []>} : vector<16x32xbf16>, vector<32x64xbf16>, vector<16x64xf32> -> vector<16x64xf32>
      %c0_99 = arith.constant 0 : index
      %c0_100 = arith.constant 0 : index
      %206 = vector.load %arg10[%c0_99, %c0_100] : memref<1x64xf32, #tpu.memory_space<vmem>>, vector<1x64xf32>
      %207 = vector.broadcast %206 : vector<1x64xf32> to vector<16x64xf32>
      %208 = arith.addf %205, %207 : vector<16x64xf32>
      %209 = arith.truncf %208 : vector<16x64xf32> to vector<16x64xbf16>
      %c0_101 = arith.constant 0 : index
      %c0_102 = arith.constant 0 : index
      %210 = vector.load %arg20[%c0_101, %c0_102] : memref<16x64xbf16, #tpu.memory_space<vmem>>, vector<16x64xbf16>
      tpu.vector_store %arg20[%c0_101, %c0_102], %209 {strides = array<i32>} : memref<16x64xbf16, #tpu.memory_space<vmem>>, vector<16x64xbf16>,
    } else {
    }
    %c8_i32 = arith.constant 8 : i32
    %5 = arith.muli %arg1, %c8_i32 : i32
    %6 = tpu.assume_multiple %5, 8 : i32
    %c0_4 = arith.constant 0 : index
    %7 = arith.index_cast %6 : i32 to index
    %c0_5 = arith.constant 0 : index
    %8 = vector.load %arg2[%c0_4, %7, %c0_5] : memref<1x16x32xf32, #tpu.memory_space<vmem>>, vector<1x8x32xf32>
    %9 = vector.shape_cast %8 : vector<1x8x32xf32> to vector<8x32xf32>
    %c0_6 = arith.constant 0 : index
    %c0_7 = arith.constant 0 : index
    %c0_8 = arith.constant 0 : index
    %10 = vector.load %arg3[%c0_6, %c0_7, %c0_8] : memref<1x1x16xf32, #tpu.memory_space<vmem>>, vector<1x1x16xf32>
    %11 = vector.shape_cast %10 : vector<1x1x16xf32> to vector<1x16xf32>
    %c0_9 = arith.constant 0 : index
    %c0_10 = arith.constant 0 : index
    %c0_11 = arith.constant 0 : index
    %12 = vector.load %arg4[%c0_9, %c0_10, %c0_11] : memref<1x8x1xf32, #tpu.memory_space<vmem>>, vector<1x8x1xf32>
    %13 = vector.shape_cast %12 : vector<1x8x1xf32> to vector<8x1xf32>
    %cst = arith.constant dense<0.000000e+00> : vector<8xf32>
    %14 = vector.multi_reduction <add>, %9, %cst [1] : vector<8x32xf32> to vector<8xf32>
    %15 = vector.shape_cast %14 : vector<8xf32> to vector<8x1xf32>
    %cst_12 = arith.constant 3.200000e+01 : f32
    %16 = vector.broadcast %cst_12 : f32 to vector<8x1xf32>
    %17 = arith.divf %15, %16 : vector<8x1xf32>
    %18 = vector.broadcast %17 : vector<8x1xf32> to vector<8x32xf32>
    %19 = arith.subf %9, %18 : vector<8x32xf32>
    %20 = arith.mulf %19, %19 : vector<8x32xf32>
    %cst_13 = arith.constant dense<0.000000e+00> : vector<8xf32>
    %21 = vector.multi_reduction <add>, %20, %cst_13 [1] : vector<8x32xf32> to vector<8xf32>
    %22 = vector.shape_cast %21 : vector<8xf32> to vector<8x1xf32>
    %cst_14 = arith.constant 3.200000e+01 : f32
    %23 = vector.broadcast %cst_14 : f32 to vector<8x1xf32>
    %24 = arith.divf %22, %23 : vector<8x1xf32>
    %25 = vector.broadcast %17 : vector<8x1xf32> to vector<8x32xf32>
    %26 = arith.subf %9, %25 : vector<8x32xf32>
    %cst_15 = arith.constant 9.99999974E-6 : f32
    %27 = vector.broadcast %cst_15 : f32 to vector<8x1xf32>
    %28 = arith.addf %24, %27 : vector<8x1xf32>
    %29 = math.rsqrt %28 : vector<8x1xf32>
    %30 = vector.broadcast %29 : vector<8x1xf32> to vector<8x32xf32>
    %31 = arith.mulf %26, %30 : vector<8x32xf32>
    %32 = vector.broadcast %0 : vector<1x32xf32> to vector<8x32xf32>
    %33 = arith.mulf %31, %32 : vector<8x32xf32>
    %34 = vector.broadcast %1 : vector<1x32xf32> to vector<8x32xf32>
    %35 = arith.addf %33, %34 : vector<8x32xf32>
    %36 = arith.truncf %35 : vector<8x32xf32> to vector<8x32xbf16>
    %c0_16 = arith.constant 0 : index
    %c0_17 = arith.constant 0 : index
    %37 = vector.load %arg7[%c0_16, %c0_17] : memref<32x32xbf16, #tpu.memory_space<vmem>>, vector<32x32xbf16>
    %cst_18 = arith.constant dense<0.000000e+00> : vector<8x32xf32>
    %38 = tpu.matmul %36, %37, %cst_18 {dimension_numbers = #tpu.dot_dimension_numbers<[1], [0], [0], [1], [0, 0, 1, 1], [], []>} : vector<8x32xbf16>, vector<32x32xbf16>, vector<8x32xf32> -> vector<8x32xf32>
    %c0_19 = arith.constant 0 : index
    %c0_20 = arith.constant 0 : index
    %39 = vector.load %arg8[%c0_19, %c0_20] : memref<1x32xf32, #tpu.memory_space<vmem>>, vector<1x32xf32>
    %40 = vector.broadcast %39 : vector<1x32xf32> to vector<8x32xf32>
    %41 = arith.addf %38, %40 : vector<8x32xf32>
    %42 = arith.truncf %41 : vector<8x32xf32> to vector<8x32xbf16>
    %c0_21 = arith.constant 0 : index
    %c0_22 = arith.constant 0 : index
    %43 = vector.load %arg20[%c0_21, %c0_22] : memref<16x64xbf16, #tpu.memory_space<vmem>>, vector<16x8xbf16>
    %c0_23 = arith.constant 0 : index
    %c32 = arith.constant 32 : index
    %44 = vector.load %arg20[%c0_23, %c32] : memref<16x64xbf16, #tpu.memory_space<vmem>>, vector<16x8xbf16>
    %45 = vector.extract_strided_slice %42 {offsets = [0, 0], sizes = [8, 8], strides = [1, 1]} : vector<8x32xbf16> to vector<8x8xbf16>
    %cst_24 = arith.constant dense<0.000000e+00> : vector<8x16xf32>
    %46 = tpu.matmul %45, %43, %cst_24 {dimension_numbers = #tpu.dot_dimension_numbers<[1], [1], [0], [0], [0, 0, 1, 0], [], []>} : vector<8x8xbf16>, vector<16x8xbf16>, vector<8x16xf32> -> vector<8x16xf32>
    %cst_25 = arith.constant 0.353553385 : f32
    %47 = vector.broadcast %cst_25 : f32 to vector<8x16xf32>
    %48 = arith.mulf %46, %47 : vector<8x16xf32>
    %49 = vector.broadcast %11 : vector<1x16xf32> to vector<8x16xf32>
    %50 = arith.addf %48, %49 : vector<8x16xf32>
    %cst_26 = arith.constant dense<0xFF800000> : vector<8xf32>
    %51 = vector.multi_reduction <maximumf>, %50, %cst_26 [1] : vector<8x16xf32> to vector<8xf32>
    %52 = vector.shape_cast %51 : vector<8xf32> to vector<8x1xf32>
    %53 = vector.broadcast %52 : vector<8x1xf32> to vector<8x16xf32>
    %54 = arith.subf %50, %53 : vector<8x16xf32>
    %55 = math.exp %54 : vector<8x16xf32>
    %cst_27 = arith.constant dense<0.000000e+00> : vector<8xf32>
    %56 = vector.multi_reduction <add>, %55, %cst_27 [1] : vector<8x16xf32> to vector<8xf32>
    %57 = vector.shape_cast %56 : vector<8xf32> to vector<8x1xf32>
    %58 = tpu.reciprocal %57 {approx = true} : vector<8x1xf32> -> vector<8x1xf32>
    %59 = vector.broadcast %58 : vector<8x1xf32> to vector<8x16xf32>
    %60 = arith.mulf %55, %59 : vector<8x16xf32>
    %61 = arith.truncf %60 : vector<8x16xf32> to vector<8x16xbf16>
    %cst_28 = arith.constant dense<0.000000e+00> : vector<8x8xf32>
    %62 = tpu.matmul %61, %44, %cst_28 {dimension_numbers = #tpu.dot_dimension_numbers<[1], [0], [0], [1], [0, 0, 1, 1], [], []>} : vector<8x16xbf16>, vector<16x8xbf16>, vector<8x8xf32> -> vector<8x8xf32>
    %c0_29 = arith.constant 0 : index
    %c0_30 = arith.constant 0 : index
    %63 = vector.load %arg21[%c0_29, %c0_30] : memref<8x32xf32, #tpu.memory_space<vmem>>, vector<8x8xf32>
    tpu.vector_store %arg21[%c0_29, %c0_30], %62 {strides = array<i32>} : memref<8x32xf32, #tpu.memory_space<vmem>>, vector<8x8xf32>,
    %c0_31 = arith.constant 0 : index
    %c8 = arith.constant 8 : index
    %64 = vector.load %arg20[%c0_31, %c8] : memref<16x64xbf16, #tpu.memory_space<vmem>>, vector<16x8xbf16>
    %c0_32 = arith.constant 0 : index
    %c40 = arith.constant 40 : index
    %65 = vector.load %arg20[%c0_32, %c40] : memref<16x64xbf16, #tpu.memory_space<vmem>>, vector<16x8xbf16>
    %66 = vector.extract_strided_slice %42 {offsets = [0, 8], sizes = [8, 8], strides = [1, 1]} : vector<8x32xbf16> to vector<8x8xbf16>
    %cst_33 = arith.constant dense<0.000000e+00> : vector<8x16xf32>
    %67 = tpu.matmul %66, %64, %cst_33 {dimension_numbers = #tpu.dot_dimension_numbers<[1], [1], [0], [0], [0, 0, 1, 0], [], []>} : vector<8x8xbf16>, vector<16x8xbf16>, vector<8x16xf32> -> vector<8x16xf32>
    %cst_34 = arith.constant 0.353553385 : f32
    %68 = vector.broadcast %cst_34 : f32 to vector<8x16xf32>
    %69 = arith.mulf %67, %68 : vector<8x16xf32>
    %70 = vector.broadcast %11 : vector<1x16xf32> to vector<8x16xf32>
    %71 = arith.addf %69, %70 : vector<8x16xf32>
    %cst_35 = arith.constant dense<0xFF800000> : vector<8xf32>
    %72 = vector.multi_reduction <maximumf>, %71, %cst_35 [1] : vector<8x16xf32> to vector<8xf32>
    %73 = vector.shape_cast %72 : vector<8xf32> to vector<8x1xf32>
    %74 = vector.broadcast %73 : vector<8x1xf32> to vector<8x16xf32>
    %75 = arith.subf %71, %74 : vector<8x16xf32>
    %76 = math.exp %75 : vector<8x16xf32>
    %cst_36 = arith.constant dense<0.000000e+00> : vector<8xf32>
    %77 = vector.multi_reduction <add>, %76, %cst_36 [1] : vector<8x16xf32> to vector<8xf32>
    %78 = vector.shape_cast %77 : vector<8xf32> to vector<8x1xf32>
    %79 = tpu.reciprocal %78 {approx = true} : vector<8x1xf32> -> vector<8x1xf32>
    %80 = vector.broadcast %79 : vector<8x1xf32> to vector<8x16xf32>
    %81 = arith.mulf %76, %80 : vector<8x16xf32>
    %82 = arith.truncf %81 : vector<8x16xf32> to vector<8x16xbf16>
    %cst_37 = arith.constant dense<0.000000e+00> : vector<8x8xf32>
    %83 = tpu.matmul %82, %65, %cst_37 {dimension_numbers = #tpu.dot_dimension_numbers<[1], [0], [0], [1], [0, 0, 1, 1], [], []>} : vector<8x16xbf16>, vector<16x8xbf16>, vector<8x8xf32> -> vector<8x8xf32>
    %c0_38 = arith.constant 0 : index
    %c8_39 = arith.constant 8 : index
    %84 = vector.load %arg21[%c0_38, %c8_39] : memref<8x32xf32, #tpu.memory_space<vmem>>, vector<8x8xf32>
    tpu.vector_store %arg21[%c0_38, %c8_39], %83 {strides = array<i32>} : memref<8x32xf32, #tpu.memory_space<vmem>>, vector<8x8xf32>,
    %c0_40 = arith.constant 0 : index
    %c16 = arith.constant 16 : index
    %85 = vector.load %arg20[%c0_40, %c16] : memref<16x64xbf16, #tpu.memory_space<vmem>>, vector<16x8xbf16>
    %c0_41 = arith.constant 0 : index
    %c48 = arith.constant 48 : index
    %86 = vector.load %arg20[%c0_41, %c48] : memref<16x64xbf16, #tpu.memory_space<vmem>>, vector<16x8xbf16>
    %87 = vector.extract_strided_slice %42 {offsets = [0, 16], sizes = [8, 8], strides = [1, 1]} : vector<8x32xbf16> to vector<8x8xbf16>
    %cst_42 = arith.constant dense<0.000000e+00> : vector<8x16xf32>
    %88 = tpu.matmul %87, %85, %cst_42 {dimension_numbers = #tpu.dot_dimension_numbers<[1], [1], [0], [0], [0, 0, 1, 0], [], []>} : vector<8x8xbf16>, vector<16x8xbf16>, vector<8x16xf32> -> vector<8x16xf32>
    %cst_43 = arith.constant 0.353553385 : f32
    %89 = vector.broadcast %cst_43 : f32 to vector<8x16xf32>
    %90 = arith.mulf %88, %89 : vector<8x16xf32>
    %91 = vector.broadcast %11 : vector<1x16xf32> to vector<8x16xf32>
    %92 = arith.addf %90, %91 : vector<8x16xf32>
    %cst_44 = arith.constant dense<0xFF800000> : vector<8xf32>
    %93 = vector.multi_reduction <maximumf>, %92, %cst_44 [1] : vector<8x16xf32> to vector<8xf32>
    %94 = vector.shape_cast %93 : vector<8xf32> to vector<8x1xf32>
    %95 = vector.broadcast %94 : vector<8x1xf32> to vector<8x16xf32>
    %96 = arith.subf %92, %95 : vector<8x16xf32>
    %97 = math.exp %96 : vector<8x16xf32>
    %cst_45 = arith.constant dense<0.000000e+00> : vector<8xf32>
    %98 = vector.multi_reduction <add>, %97, %cst_45 [1] : vector<8x16xf32> to vector<8xf32>
    %99 = vector.shape_cast %98 : vector<8xf32> to vector<8x1xf32>
    %100 = tpu.reciprocal %99 {approx = true} : vector<8x1xf32> -> vector<8x1xf32>
    %101 = vector.broadcast %100 : vector<8x1xf32> to vector<8x16xf32>
    %102 = arith.mulf %97, %101 : vector<8x16xf32>
    %103 = arith.truncf %102 : vector<8x16xf32> to vector<8x16xbf16>
    %cst_46 = arith.constant dense<0.000000e+00> : vector<8x8xf32>
    %104 = tpu.matmul %103, %86, %cst_46 {dimension_numbers = #tpu.dot_dimension_numbers<[1], [0], [0], [1], [0, 0, 1, 1], [], []>} : vector<8x16xbf16>, vector<16x8xbf16>, vector<8x8xf32> -> vector<8x8xf32>
    %c0_47 = arith.constant 0 : index
    %c16_48 = arith.constant 16 : index
    %105 = vector.load %arg21[%c0_47, %c16_48] : memref<8x32xf32, #tpu.memory_space<vmem>>, vector<8x8xf32>
    tpu.vector_store %arg21[%c0_47, %c16_48], %104 {strides = array<i32>} : memref<8x32xf32, #tpu.memory_space<vmem>>, vector<8x8xf32>,
    %c0_49 = arith.constant 0 : index
    %c24 = arith.constant 24 : index
    %106 = vector.load %arg20[%c0_49, %c24] : memref<16x64xbf16, #tpu.memory_space<vmem>>, vector<16x8xbf16>
    %c0_50 = arith.constant 0 : index
    %c56 = arith.constant 56 : index
    %107 = vector.load %arg20[%c0_50, %c56] : memref<16x64xbf16, #tpu.memory_space<vmem>>, vector<16x8xbf16>
    %108 = vector.extract_strided_slice %42 {offsets = [0, 24], sizes = [8, 8], strides = [1, 1]} : vector<8x32xbf16> to vector<8x8xbf16>
    %cst_51 = arith.constant dense<0.000000e+00> : vector<8x16xf32>
    %109 = tpu.matmul %108, %106, %cst_51 {dimension_numbers = #tpu.dot_dimension_numbers<[1], [1], [0], [0], [0, 0, 1, 0], [], []>} : vector<8x8xbf16>, vector<16x8xbf16>, vector<8x16xf32> -> vector<8x16xf32>
    %cst_52 = arith.constant 0.353553385 : f32
    %110 = vector.broadcast %cst_52 : f32 to vector<8x16xf32>
    %111 = arith.mulf %109, %110 : vector<8x16xf32>
    %112 = vector.broadcast %11 : vector<1x16xf32> to vector<8x16xf32>
    %113 = arith.addf %111, %112 : vector<8x16xf32>
    %cst_53 = arith.constant dense<0xFF800000> : vector<8xf32>
    %114 = vector.multi_reduction <maximumf>, %113, %cst_53 [1] : vector<8x16xf32> to vector<8xf32>
    %115 = vector.shape_cast %114 : vector<8xf32> to vector<8x1xf32>
    %116 = vector.broadcast %115 : vector<8x1xf32> to vector<8x16xf32>
    %117 = arith.subf %113, %116 : vector<8x16xf32>
    %118 = math.exp %117 : vector<8x16xf32>
    %cst_54 = arith.constant dense<0.000000e+00> : vector<8xf32>
    %119 = vector.multi_reduction <add>, %118, %cst_54 [1] : vector<8x16xf32> to vector<8xf32>
    %120 = vector.shape_cast %119 : vector<8xf32> to vector<8x1xf32>
    %121 = tpu.reciprocal %120 {approx = true} : vector<8x1xf32> -> vector<8x1xf32>
    %122 = vector.broadcast %121 : vector<8x1xf32> to vector<8x16xf32>
    %123 = arith.mulf %118, %122 : vector<8x16xf32>
    %124 = arith.truncf %123 : vector<8x16xf32> to vector<8x16xbf16>
    %cst_55 = arith.constant dense<0.000000e+00> : vector<8x8xf32>
    %125 = tpu.matmul %124, %107, %cst_55 {dimension_numbers = #tpu.dot_dimension_numbers<[1], [0], [0], [1], [0, 0, 1, 1], [], []>} : vector<8x16xbf16>, vector<16x8xbf16>, vector<8x8xf32> -> vector<8x8xf32>
    %c0_56 = arith.constant 0 : index
    %c24_57 = arith.constant 24 : index
    %126 = vector.load %arg21[%c0_56, %c24_57] : memref<8x32xf32, #tpu.memory_space<vmem>>, vector<8x8xf32>
    tpu.vector_store %arg21[%c0_56, %c24_57], %125 {strides = array<i32>} : memref<8x32xf32, #tpu.memory_space<vmem>>, vector<8x8xf32>,
    %c0_58 = arith.constant 0 : index
    %c0_59 = arith.constant 0 : index
    %127 = vector.load %arg21[%c0_58, %c0_59] : memref<8x32xf32, #tpu.memory_space<vmem>>, vector<8x32xf32>
    %128 = arith.truncf %127 : vector<8x32xf32> to vector<8x32xbf16>
    %c0_60 = arith.constant 0 : index
    %c0_61 = arith.constant 0 : index
    %129 = vector.load %arg11[%c0_60, %c0_61] : memref<32x32xbf16, #tpu.memory_space<vmem>>, vector<32x32xbf16>
    %cst_62 = arith.constant dense<0.000000e+00> : vector<8x32xf32>
    %130 = tpu.matmul %128, %129, %cst_62 {dimension_numbers = #tpu.dot_dimension_numbers<[1], [0], [0], [1], [0, 0, 1, 1], [], []>} : vector<8x32xbf16>, vector<32x32xbf16>, vector<8x32xf32> -> vector<8x32xf32>
    %c0_63 = arith.constant 0 : index
    %c0_64 = arith.constant 0 : index
    %131 = vector.load %arg12[%c0_63, %c0_64] : memref<1x32xf32, #tpu.memory_space<vmem>>, vector<1x32xf32>
    %132 = vector.broadcast %131 : vector<1x32xf32> to vector<8x32xf32>
    %133 = arith.addf %130, %132 : vector<8x32xf32>
    %134 = arith.addf %9, %133 : vector<8x32xf32>
    %c0_65 = arith.constant 0 : index
    %c0_66 = arith.constant 0 : index
    %135 = vector.load %arg13[%c0_65, %c0_66] : memref<1x32xf32, #tpu.memory_space<vmem>>, vector<1x32xf32>
    %c0_67 = arith.constant 0 : index
    %c0_68 = arith.constant 0 : index
    %136 = vector.load %arg14[%c0_67, %c0_68] : memref<1x32xf32, #tpu.memory_space<vmem>>, vector<1x32xf32>
    %cst_69 = arith.constant dense<0.000000e+00> : vector<8xf32>
    %137 = vector.multi_reduction <add>, %134, %cst_69 [1] : vector<8x32xf32> to vector<8xf32>
    %138 = vector.shape_cast %137 : vector<8xf32> to vector<8x1xf32>
    %cst_70 = arith.constant 3.200000e+01 : f32
    %139 = vector.broadcast %cst_70 : f32 to vector<8x1xf32>
    %140 = arith.divf %138, %139 : vector<8x1xf32>
    %141 = vector.broadcast %140 : vector<8x1xf32> to vector<8x32xf32>
    %142 = arith.subf %134, %141 : vector<8x32xf32>
    %143 = arith.mulf %142, %142 : vector<8x32xf32>
    %cst_71 = arith.constant dense<0.000000e+00> : vector<8xf32>
    %144 = vector.multi_reduction <add>, %143, %cst_71 [1] : vector<8x32xf32> to vector<8xf32>
    %145 = vector.shape_cast %144 : vector<8xf32> to vector<8x1xf32>
    %cst_72 = arith.constant 3.200000e+01 : f32
    %146 = vector.broadcast %cst_72 : f32 to vector<8x1xf32>
    %147 = arith.divf %145, %146 : vector<8x1xf32>
    %148 = vector.broadcast %140 : vector<8x1xf32> to vector<8x32xf32>
    %149 = arith.subf %134, %148 : vector<8x32xf32>
    %cst_73 = arith.constant 9.99999974E-6 : f32
    %150 = vector.broadcast %cst_73 : f32 to vector<8x1xf32>
    %151 = arith.addf %147, %150 : vector<8x1xf32>
    %152 = math.rsqrt %151 : vector<8x1xf32>
    %153 = vector.broadcast %152 : vector<8x1xf32> to vector<8x32xf32>
    %154 = arith.mulf %149, %153 : vector<8x32xf32>
    %155 = vector.broadcast %135 : vector<1x32xf32> to vector<8x32xf32>
    %156 = arith.mulf %154, %155 : vector<8x32xf32>
    %157 = vector.broadcast %136 : vector<1x32xf32> to vector<8x32xf32>
    %158 = arith.addf %156, %157 : vector<8x32xf32>
    %159 = arith.truncf %158 : vector<8x32xf32> to vector<8x32xbf16>
    %c0_74 = arith.constant 0 : index
    %c0_75 = arith.constant 0 : index
    %160 = vector.load %arg15[%c0_74, %c0_75] : memref<32x128xbf16, #tpu.memory_space<vmem>>, vector<32x128xbf16>
    %cst_76 = arith.constant dense<0.000000e+00> : vector<8x128xf32>
    %161 = tpu.matmul %159, %160, %cst_76 {dimension_numbers = #tpu.dot_dimension_numbers<[1], [0], [0], [1], [0, 0, 1, 1], [], []>} : vector<8x32xbf16>, vector<32x128xbf16>, vector<8x128xf32> -> vector<8x128xf32>
    %c0_77 = arith.constant 0 : index
    %c0_78 = arith.constant 0 : index
    %162 = vector.load %arg16[%c0_77, %c0_78] : memref<1x128xf32, #tpu.memory_space<vmem>>, vector<1x128xf32>
    %163 = vector.broadcast %162 : vector<1x128xf32> to vector<8x128xf32>
    %164 = arith.addf %161, %163 : vector<8x128xf32>
    %cst_79 = arith.constant 0.000000e+00 : f32
    %165 = vector.broadcast %cst_79 : f32 to vector<8x128xf32>
    %166 = arith.maximumf %164, %165 : vector<8x128xf32>
    %167 = arith.truncf %166 : vector<8x128xf32> to vector<8x128xbf16>
    %c0_80 = arith.constant 0 : index
    %c0_81 = arith.constant 0 : index
    %168 = vector.load %arg17[%c0_80, %c0_81] : memref<128x32xbf16, #tpu.memory_space<vmem>>, vector<128x32xbf16>
    %cst_82 = arith.constant dense<0.000000e+00> : vector<8x32xf32>
    %169 = tpu.matmul %167, %168, %cst_82 {dimension_numbers = #tpu.dot_dimension_numbers<[1], [0], [0], [1], [0, 0, 1, 1], [], []>} : vector<8x128xbf16>, vector<128x32xbf16>, vector<8x32xf32> -> vector<8x32xf32>
    %c0_83 = arith.constant 0 : index
    %c0_84 = arith.constant 0 : index
    %170 = vector.load %arg18[%c0_83, %c0_84] : memref<1x32xf32, #tpu.memory_space<vmem>>, vector<1x32xf32>
    %171 = vector.broadcast %170 : vector<1x32xf32> to vector<8x32xf32>
    %172 = arith.addf %169, %171 : vector<8x32xf32>
    %173 = arith.addf %134, %172 : vector<8x32xf32>
    %174 = vector.broadcast %13 : vector<8x1xf32> to vector<8x32xf32>
    %175 = arith.mulf %173, %174 : vector<8x32xf32>
    %c0_85 = arith.constant 0 : index
    %c0_86 = arith.constant 0 : index
    %c0_87 = arith.constant 0 : index
    %176 = vector.load %arg19[%c0_85, %c0_86, %c0_87] : memref<1x8x32xf32, #tpu.memory_space<vmem>>, vector<1x8x32xf32>
    %177 = vector.shape_cast %176 : vector<1x8x32xf32> to vector<8x32xf32>
    %178 = vector.shape_cast %175 : vector<8x32xf32> to vector<1x8x32xf32>
    tpu.vector_store %arg19[%c0_85, %c0_86, %c0_87], %178 {strides = array<i32>} : memref<1x8x32xf32, #tpu.memory_space<vmem>>, vector<1x8x32xf32>,
    return
  }
  func.func @transform_0(%arg0: i32, %arg1: i32) -> (i32, i32, i32) {
    %c0_i32 = arith.constant 0 : i32
    %c0_i32_0 = arith.constant 0 : i32
    %c0_i32_1 = arith.constant 0 : i32
    return %arg0, %c0_i32, %c0_i32_0 : i32, i32, i32
  }
  func.func @transform_1(%arg0: i32, %arg1: i32) -> (i32, i32, i32) {
    %c0_i32 = arith.constant 0 : i32
    %c0_i32_0 = arith.constant 0 : i32
    %c0_i32_1 = arith.constant 0 : i32
    return %arg0, %c0_i32, %c0_i32_0 : i32, i32, i32
  }
  func.func @transform_2(%arg0: i32, %arg1: i32) -> (i32, i32, i32) {
    %c0_i32 = arith.constant 0 : i32
    %c0_i32_0 = arith.constant 0 : i32
    return %arg0, %arg1, %c0_i32 : i32, i32, i32
  }
  func.func @transform_3(%arg0: i32, %arg1: i32) -> (i32, i32) {
    %c0_i32 = arith.constant 0 : i32
    %c0_i32_0 = arith.constant 0 : i32
    %c0_i32_1 = arith.constant 0 : i32
    return %c0_i32, %c0_i32_0 : i32, i32
  }
  func.func @transform_4(%arg0: i32, %arg1: i32) -> (i32, i32) {
    %c0_i32 = arith.constant 0 : i32
    %c0_i32_0 = arith.constant 0 : i32
    %c0_i32_1 = arith.constant 0 : i32
    return %c0_i32, %c0_i32_0 : i32, i32
  }
  func.func @transform_5(%arg0: i32, %arg1: i32) -> (i32, i32) {
    %c0_i32 = arith.constant 0 : i32
    %c0_i32_0 = arith.constant 0 : i32
    %c0_i32_1 = arith.constant 0 : i32
    return %c0_i32, %c0_i32_0 : i32, i32
  }
  func.func @transform_6(%arg0: i32, %arg1: i32) -> (i32, i32) {
    %c0_i32 = arith.constant 0 : i32
    %c0_i32_0 = arith.constant 0 : i32
    %c0_i32_1 = arith.constant 0 : i32
    return %c0_i32, %c0_i32_0 : i32, i32
  }
  func.func @transform_7(%arg0: i32, %arg1: i32) -> (i32, i32) {
    %c0_i32 = arith.constant 0 : i32
    %c0_i32_0 = arith.constant 0 : i32
    %c0_i32_1 = arith.constant 0 : i32
    return %c0_i32, %c0_i32_0 : i32, i32
  }
  func.func @transform_8(%arg0: i32, %arg1: i32) -> (i32, i32) {
    %c0_i32 = arith.constant 0 : i32
    %c0_i32_0 = arith.constant 0 : i32
    %c0_i32_1 = arith.constant 0 : i32
    return %c0_i32, %c0_i32_0 : i32, i32
  }
  func.func @transform_9(%arg0: i32, %arg1: i32) -> (i32, i32) {
    %c0_i32 = arith.constant 0 : i32
    %c0_i32_0 = arith.constant 0 : i32
    %c0_i32_1 = arith.constant 0 : i32
    return %c0_i32, %c0_i32_0 : i32, i32
  }
  func.func @transform_10(%arg0: i32, %arg1: i32) -> (i32, i32) {
    %c0_i32 = arith.constant 0 : i32
    %c0_i32_0 = arith.constant 0 : i32
    %c0_i32_1 = arith.constant 0 : i32
    return %c0_i32, %c0_i32_0 : i32, i32
  }
  func.func @transform_11(%arg0: i32, %arg1: i32) -> (i32, i32) {
    %c0_i32 = arith.constant 0 : i32
    %c0_i32_0 = arith.constant 0 : i32
    %c0_i32_1 = arith.constant 0 : i32
    return %c0_i32, %c0_i32_0 : i32, i32
  }
  func.func @transform_12(%arg0: i32, %arg1: i32) -> (i32, i32) {
    %c0_i32 = arith.constant 0 : i32
    %c0_i32_0 = arith.constant 0 : i32
    %c0_i32_1 = arith.constant 0 : i32
    return %c0_i32, %c0_i32_0 : i32, i32
  }
  func.func @transform_13(%arg0: i32, %arg1: i32) -> (i32, i32) {
    %c0_i32 = arith.constant 0 : i32
    %c0_i32_0 = arith.constant 0 : i32
    %c0_i32_1 = arith.constant 0 : i32
    return %c0_i32, %c0_i32_0 : i32, i32
  }
  func.func @transform_14(%arg0: i32, %arg1: i32) -> (i32, i32) {
    %c0_i32 = arith.constant 0 : i32
    %c0_i32_0 = arith.constant 0 : i32
    %c0_i32_1 = arith.constant 0 : i32
    return %c0_i32, %c0_i32_0 : i32, i32
  }
  func.func @transform_15(%arg0: i32, %arg1: i32) -> (i32, i32) {
    %c0_i32 = arith.constant 0 : i32
    %c0_i32_0 = arith.constant 0 : i32
    %c0_i32_1 = arith.constant 0 : i32
    return %c0_i32, %c0_i32_0 : i32, i32
  }
  func.func @transform_16(%arg0: i32, %arg1: i32) -> (i32, i32) {
    %c0_i32 = arith.constant 0 : i32
    %c0_i32_0 = arith.constant 0 : i32
    %c0_i32_1 = arith.constant 0 : i32
    return %c0_i32, %c0_i32_0 : i32, i32
  }
  func.func @transform_17(%arg0: i32, %arg1: i32) -> (i32, i32, i32) {
    %c0_i32 = arith.constant 0 : i32
    %c0_i32_0 = arith.constant 0 : i32
    return %arg0, %arg1, %c0_i32 : i32, i32, i32
  }
}

</mosaic_0001>

<bundles_post_ra>
// kernel: transformer_block_rpe_forward.1
= control target key start
LH: loop header
LB: loop body
LE: loop exit
PB: predicated region body
PF: predicated region fallthrough
CT: control target
= control target key end

     0   :  { %s2586_s0 = inlined_call_operand.vmem [shape: f32[2,16,32], index: 0, kind: input, shape index: {}]   ;;  %s2587_s1 = inlined_call_operand.vmem [shape: f32[2,1,16], index: 1, kind: input, shape index: {}]   ;;  %s2588_s2 = inlined_call_operand.vmem [shape: f32[2,16,1], index: 2, kind: input, shape index: {}]   ;;  %s2589_s3 = inlined_call_operand.vmem [shape: f32[1,32], index: 3, kind: input, shape index: {}]   ;;  %s2590_s4 = inlined_call_operand.vmem [shape: f32[1,32], index: 4, kind: input, shape index: {}]   ;;  %s2591_s5 = inlined_call_operand.vmem [shape: bf16[32,32], index: 5, kind: input, shape index: {}]   ;;  %s2592_s6 = inlined_call_operand.vmem [shape: f32[1,32], index: 6, kind: input, shape index: {}]   ;;  %s2593_s7 = inlined_call_operand.vmem [shape: bf16[32,64], index: 7, kind: input, shape index: {}]   ;;  %s2594_s8 = inlined_call_operand.vmem [shape: f32[1,64], index: 8, kind: input, shape index: {}]   ;;  %s2595_s9 = inlined_call_operand.vmem [shape: bf16[32,32], index: 9, kind: input, shape index: {}]   ;;  %s2596_s10 = inlined_call_operand.vmem [shape: f32[1,32], index: 10, kind: input, shape index: {}]   ;;  %s2597_s11 = inlined_call_operand.vmem [shape: f32[1,32], index: 11, kind: input, shape index: {}]   ;;  %s2598_s12 = inlined_call_operand.vmem [shape: f32[1,32], index: 12, kind: input, shape index: {}]   ;;  %s2599_s13 = inlined_call_operand.vmem [shape: bf16[32,128], index: 13, kind: input, shape index: {}]   ;;  %s2600_s14 = inlined_call_operand.vmem [shape: f32[1,128], index: 14, kind: input, shape index: {}]   ;;  %s2601_s15 = inlined_call_operand.vmem [shape: bf16[128,32], index: 15, kind: input, shape index: {}]   ;;  %s2602_s16 = inlined_call_operand.vmem [shape: f32[1,32], index: 16, kind: input, shape index: {}]   ;;  %s2603_s17 = inlined_call_operand.hbm [shape: f32[2,16,32], index: 17, kind: output, shape index: {}]  }
   0x1   :  { %2619 = sst [smem:[#allocation19_spill]] %s2586_s0 }
   0x2   :  { %2620 = sst [smem:[#allocation20_spill]] %s2587_s1 }
   0x3   :  { %2621 = sst [smem:[#allocation21_spill]] %s2589_s3 }
   0x4   :  { %2622 = sst [smem:[#allocation22_spill]] %s2590_s4 }
   0x5   :  { %2623 = sst [smem:[#allocation23_spill]] %s2600_s14 }
   0x6   :  { %2624 = sst [smem:[#allocation24_spill]] %s2602_s16 }
   0x7   :  { %2625 = sst [smem:[#allocation25_spill]] %s2603_s17 }
   0x8   :  { %22 = vsyncpa [#allocation5], 0 }
   0x9   :  { %24 = vsyncpa [#allocation5 + $0x1], 0  ;;  %s2227_s24 = smov 0   ;;  %s2229_s25 = smov 0  }
   0xa   :  { %s2231_s26 = smov 0   ;;  %s2233_s27 = smov 0  }
   0xb   :  { %s2235_s28 = smov 0   ;;  %s2237_s29 = smov 0  }
   0xc   :  { %s2239_s0 = smov 0   ;;  %s2241_s30 = smov 0  }
   0xd LB: > { %2626 = sst [smem:[#allocation7_spill]] %s2091_s24  ;;  %s1707_s18 = sadd.s32 4294967295, %s2119_s30   ;;  %s2119_s30 = sphi %s2241_s30, %s30_s30   ;;  %s2115_s0 = sphi %s2239_s0, %s2661_s0   ;;  %s2111_s29 = sphi %s2237_s29, %s2660_s29   ;;  %s2107_s28 = sphi %s2235_s28, %s2659_s28   ;;  %s2103_s27 = sphi %s2233_s27, %s2658_s27   ;;  %s2099_s26 = sphi %s2231_s26, %s2657_s26   ;;  %s2095_s25 = sphi %s2229_s25, %s2656_s25   ;;  %s2091_s24 = sphi %s2227_s24, %s2655_s24  }
   0xe   : > { %2627 = sst [smem:[#allocation8_spill]] %s2095_s25  ;;  %s1708_s19 = sadd.s32 4294967294, %s2119_s30  }
   0xf   : > { %2628 = sst [smem:[#allocation9_spill]] %s2099_s26  ;;  %s39_s1 = sadd.s32 1, %s2111_s29 }
  0x10   : > { %2629 = sst [smem:[#allocation10_spill]] %s2107_s28  ;;  %p40_p0 = scmp.ge.s32.totalorder %s39_s1, 2 }
  0x11   : > { %2630 = sst [smem:[#allocation11_spill]] %s2111_s29  ;;  %s42_s20 = sadd.s32 1, %s2115_s0 }
  0x12   : > { %2631 = sst [smem:[#allocation12_spill]] %s2115_s0  ;;  %p435_p1 = scmp.ne.s32.totalorder %s2099_s26, %s2095_s25 }
  0x13   : > { %2632 = sst [smem:[#allocation13_spill]] %s2119_s30  ;;  %p436_p2 = scmp.eq.s32.totalorder %s1707_s18, 3 }
  0x14   : > { %s2663_s1 = smov (%p40_p0, %s39_s1), 0  ;;  %s2665_s20 = smov (!%p40_p0, %s42_s20), %s2115_s0 }
  0x15   : > { %2633 = sst [smem:[#allocation14_spill]] %s2663_s1  ;;  %s421_s21 = ssub.s32 %s2111_s29, %s2663_s1 }
  0x16   : > { %p2278_p3 = por %p436_p2, %p435_p1  ;;  %p44_p4 = scmp.ge.s32.totalorder %s2665_s20, 2 }
  0x17   : > { %p441_p5 = scmp.ne.s32.totalorder %s2095_s25, %s2091_s24  ;;  %p442_p6 = scmp.eq.s32.totalorder %s1708_s19, 3 }
  0x18   : > { %s2634_s22 = scalar_select %p2278_p3, 1, 0 }
  0x19   : > { %p1711_p7 = scmp.ge.s32.totalorder %s2119_s30, 1  ;;  %s2667_s20 = smov (%p44_p4, %s2665_s20), 0 }
  0x1a   : > { %2635 = sst [smem:[#allocation15_spill]] %s2634_s22  ;;  %p2287_p8 = por %p442_p6, %p441_p5 }
  0x1b   : > { %2636 = sst [smem:[#allocation16_spill]] %s2667_s20  ;;  %p527_p9 = scmp.lt.s32.totalorder %s2119_s30, 5 }
  0x1c   : > { %s2637_s23 = scalar_select %p2287_p8, 1, 0 }
  0x1d   : > { %s420_s18 = ssub.s32 %s2115_s0, %s2667_s20  ;;  %s425_s17 = sadd.s32 1, %s2099_s26 }
  0x1e   : > { %2638 = sst [smem:[#allocation17_spill]] %s2637_s23  ;;  %s422_s16 = sor.u32 %s421_s21, %s420_s18 }
  0x1f   : > { %p528_p10 = pnand %p1711_p7, %p527_p9  ;;  %p423_p11 = scmp.eq.s32.totalorder %s422_s16, 0 }
  0x20   : > { %s2611_s19 = sand.u32 (!%p528_p10), 1, %s2095_s25   ;;  %p590_p12 = scmp.lt.s32.totalorder (!%p528_p10), %s2107_s28, 1 }
  0x21   : > { %s2296_s1 = scalar_select %p423_p11, %s2099_s26, %s425_s17  }
  0x22   : > { %531 = sbr.rel (%p528_p10) target bundleno = 3136 (0xc40), region = 88  ;;  %s2640_s3 = sld [smem:[#allocation21_spill]] (!%p528_p10) }
  0x23   : > { %2639 = sst [smem:[#allocation18_spill]] %s2296_s1  ;;  %s2641_s4 = sld [smem:[#allocation22_spill]] (!%p528_p10) }
  0x24   : > { %s2312_s16 = sshll.u32 (!%p528_p10), %s2611_s19, 3  ;;  %p600_p13 = scmp.lt.s32.totalorder (!%p528_p10), %s2103_s27, 1 }
  0x25   : > { %s2643_s21 = sld [smem:[#allocation19_spill]] (!%p528_p10)  ;;  %p1717_p0 = scmp.ne.s32.totalorder (!%p528_p10), %s2103_s27, 0 }
  0x28   : > { %v2303_v0 = vld [vmem:[%s2640_s3] sm:$0x1] (!%p528_p10)  ;;  %s2642_s3 = sld [smem:[#allocation20_spill]] (!%p528_p10) }
  0x29   : > { %v2308_v1 = vld [vmem:[%s2641_s4] sm:$0x1]  ;;  %s2316_s17 = scalar_select %p590_p12, %s2107_s28, 1 }
  0x2a   : > { %s601_s18 = scalar_select %p600_p13, %s2103_s27, 1 }
  0x2b   : > { %s1760_s0 = sshll.u32 %s2316_s17, 4  ;;  %s1715_s19 = sshll.u32 %s2316_s17, 1  ;;  %vm615_vm0 = vcmask (!%p1717_p0), 261120   ;;  %v1984_v16 = vld [vmem:[%s2593_s7] sm:$0xff] (!%p1717_p0)   ;;  %v2121_v17 = vmov (!%p1717_p0), 0.0   ;;  %v1985_v18 = vld [vmem:[%s2593_s7 + $0x8] sm:$0xff] (!%p1717_p0)   ;;  %v644_v23 = vlaneseq (!%p1717_p0) }
  0x2c   : > { %s2327_s4 = scalar_lea.vmem %s2643_s21, %s1760_s0  ;;  %s603_s23 = sadd.s32 %s1715_s19, %s601_s18  ;;  %1798 = vmatprep.subr.bf16.mxu0 (!%p1717_p0), %v2121_v17  ;;  %vm2122_vm1 = vmmov (!%p1717_p0), 0   ;;  %v1718_v39 = vld [vmem:[%s2594_s8] ss:$0 sm:$0xff] (!%p1717_p0)  ;;  %vm728_vm2 = vcmask (!%p1717_p0), 523264  }
  0x2d   : > { %s1716_s30 = sshll.u32 %s603_s23, 3  ;;  %s589_s28 = scalar_lea.vmem [#allocation4], %s2312_s16  ;;  %v613_v2 = vld [vmem:[%s2327_s4] sm:$0xff] (!%p1717_p0)  ;;  %v614_v3 = vld [vmem:[%s2327_s4 + $0x8] sm:$0xff] (!%p1717_p0)  ;;  %1799 = vmatpush3.bf16.msra.mxu0 (!%p1717_p0), %v1984_v16  ;;  %1802 = vmatprep.mubr.msk.bf16.mxu0 (!%p1717_p0), %vm2122_vm1, %v2121_v17  ;;  %v645_v26 = vshrl.u32 (!%p1717_p0), %v644_v23, 7 }
  0x2e   : > { %s597_s1 = scalar_lea.vmem %s2642_s3, %s2316_s17  ;;  %s2333_s14 = scalar_lea.vmem %s2588_s2, %s1716_s30  ;;  %v616_v4 = vsel (!%p1717_p0), %vm615_vm0, %v613_v2, 0.0  ;;  %v619_v5 = vsel (!%p1717_p0), %vm615_vm0, %v614_v3, 0.0  ;;  %1800 = vmatprep.subr.bf16.mxu0 (!%p1717_p0), %v2121_v17 }
  0x2f   : > { %612 = sbr.rel (%p1717_p0) target bundleno = 584 (0x248), region = 92  ;;  %617 = vadd.xlane.f32.xlu0 (!%p1717_p0), %v616_v4  ;;  %v646_v27 = vsub.s32 (!%p1717_p0), 0, %v645_v26 }
  0x31   : > { %1801 = vmatpush3.bf16.msra.mxu0 (!%p1717_p0), %v1985_v18  ;;  %v647_v30 = vrot.slane (!%p1717_p0), %v2303_v0, %v646_v27  ;;  %v655_v34 = vrot.slane (!%p1717_p0), %v2308_v1, %v646_v27 }
  0x33   : > { %620 = vadd.xlane.f32.xlu0 (!%p1717_p0), %v619_v5 }
  0xbc   : > { %v618_v6 = vpop.xlane.xlu0 %617 }
  0xbd   : > { %v623_v7 = vmul.f32 0.03125, %v618_v6 }
  0xbf   : > { %v625_v8 = vsub.f32 %v613_v2, %v623_v7 }
  0xc0   : > { %v621_v9 = vpop.xlane.xlu0 %620 }
  0xc1   : > { %v624_v10 = vmul.f32 0.03125, %v621_v9  ;;  %v627_v11 = vmul.f32 %v625_v8, %v625_v8 }
  0xc3   : > { %v626_v12 = vsub.f32 %v614_v3, %v624_v10  ;;  %v629_v13 = vsel %vm615_vm0, %v627_v11, 0.0 }
  0xc4   : > { %630 = vadd.xlane.f32.xlu1 %v629_v13 }
  0xc5   : > { %v628_v14 = vmul.f32 %v626_v12, %v626_v12 }
  0xc7   : > { %v632_v15 = vsel %vm615_vm0, %v628_v14, 0.0 }
  0xc8   : > { %633 = vadd.xlane.f32.xlu1 %v632_v15 }
 0x151   : > { %v631_v19 = vpop.xlane.xlu1 %630 }
 0x152   : > { %v635_v20 = vmul.f32 0.03125, %v631_v19 }
 0x154   : > { %v637_v21 = vadd.f32 1e-05, %v635_v20 }
 0x155   : > { %v634_v22 = vpop.xlane.xlu1 %633 }
 0x156   : > { %1986 = vrsqrt.f32 %v637_v21  ;;  %v636_v24 = vmul.f32 0.03125, %v634_v22 }
 0x158   : > { %v638_v25 = vadd.f32 1e-05, %v636_v24 }
 0x15a   : > { %1988 = vrsqrt.f32 %v638_v25 }
 0x160   : > { %v1987_v28 = vpop.eup %1986 }
 0x161   : > { %v641_v29 = vmul.f32 %v1987_v28, %v625_v8 }
 0x163   : > { %v649_v33 = vmul.f32 %v647_v30, %v641_v29 }
 0x164   : > { %v1989_v31 = vpop.eup %1988 }
 0x165   : > { %v642_v32 = vmul.f32 %v1989_v31, %v626_v12  ;;  %v657_v36 = vadd.f32 %v655_v34, %v649_v33 }
 0x167   : > { %v650_v35 = vmul.f32 %v647_v30, %v642_v32 }
 0x169   : > { %v658_v37 = vadd.f32 %v655_v34, %v650_v35 }
 0x16b   : > { %v659_v38 = vpack.c.bf16 %v658_v37, %v657_v36 }
 0x16d   : > { %1803 = vmatmul.mubr.msk.bf16.vlgmr.msra.gmra.mrb[0].mxu0 %vm615_vm0, %v659_v38 }
 0x240   : > { %v720_v40 = vpop.f32.mrb[0].mxu0 }
 0x241   : > { %v1804_v41 = vpop.f32.mrb[1].mxu0  ;;  %v721_v43 = vadd.f32 %v1718_v39, %v720_v40 }
 0x242   : > { %v723_v42 = vpop.f32.mrb[2].mxu0 }
 0x243   : > { %v724_v44 = vadd.f32 %v1718_v39, %v723_v42  ;;  %v1805_v45 = vpop.f32.mrb[3].mxu0 }
 0x245   : > { %v727_v46 = vpack.c.bf16 %v724_v44, %v721_v43 }
 0x247   : > { %729 = vst.msk [vmem:[#allocation2] sm:$0xff] %vm728_vm2, %v727_v46 }
 0x248 PF: > { %s1722_s23 = sshll.u32 %s2103_s27, 3  ;;  %vm735_vm3 = vcmask 261120   ;;  %v1991_v54 = vld [vmem:[%s2591_s5] sm:$0xff]   ;;  %v2123_v55 = vmov 0.0   ;;  %vm2124_vm4 = vmmov 0   ;;  %v1992_v56 = vld [vmem:[%s2591_s5 + $0x8] sm:$0xff]   ;;  %v751_v60 = vlaneseq }
 0x249   : > { %s731_s19 = scalar_lea.vmem %s2327_s4, %s1722_s23  ;;  %1806 = vmatprep.subr.bf16.mxu0 %v2123_v55  ;;  %1810 = vmatprep.mubr.msk.bf16.mxu0 %vm2124_vm4, %v2123_v55  ;;  %s2125_s20 = smov 120   ;;  %vm833_vm5 = vcmask 64512   ;;  %v1723_v10 = vld [vmem:[%s2592_s6] ss:$0 sm:$0xff]  ;;  %vm888_vm6 = vcmask 130048   ;;  %vm1066_vm7 = vcmask 130112  }
 0x24a   : > { %v2357_v47 = vld [vmem:[%s731_s19] sm:$0xff]  ;;  %1807 = vmatpush3.bf16.msra.mxu0 %v1991_v54  ;;  %1826 = vmatprep.subr.bf16.mxu1 %v2123_v55  ;;  %v752_v62 = vshrl.u32 %v751_v60, 7  ;;  %s2126_s21 = smov 112   ;;  %s2127_s26 = smov 104   ;;  %vm1184_vm8 = vcmask 195712   ;;  %vm1302_vm9 = vcmask 261312  }
 0x24b   : > { %v736_v48 = vsel %vm735_vm3, %v2357_v47, 0.0  ;;  %1808 = vmatprep.subr.bf16.mxu0 %v2123_v55  ;;  %1828 = vmatprep.mubr.msk.bf16.mxu1 %vm2124_vm4, %v2123_v55  ;;  %v1728_v25 = vld [vmem:[%s597_s1] ss:$0 sm:$0xff]  ;;  %s2128_s1 = smov 88   ;;  %s2129_s17 = smov 96  }
 0x24c   : > { %737 = vadd.xlane.f32.xlu0 %v736_v48  ;;  %v753_v63 = vsub.s32 0, %v752_v62  ;;  %s2130_s23 = smov 72   ;;  %s2131_s19 = smov 80  }
 0x24d   : > { %s2132_s18 = smov 8   ;;  %s2134_s3 = smov 24  }
 0x24e   : > { %1809 = vmatpush3.bf16.msra.mxu0 %v1992_v56  ;;  %v2377_v57 = vld [vmem:[#allocation2] sm:$0xff]  ;;  %v754_v2 = vrot.slane %v2303_v0, %v753_v63  ;;  %v761_v5 = vrot.slane %v2308_v1, %v753_v63  ;;  %s2645_s24 = sld [smem:[#allocation10_spill]]  ;;  %s2647_s25 = sld [smem:[#allocation24_spill]] }
 0x24f   : > { %1814 = vmatprep.subr.bf16.mxu0 %v2123_v55  ;;  %954 = vrot.lane.b32.xlu1 %v2377_v57, %s2125_s20  ;;  %v838_v9 = vsel %vm833_vm5, %v2377_v57, 0  ;;  %s2136_s29 = smov [#allocation4]  }
 0x2c1   : > { %v955_v0 = vpop.permute.xlu1 %954 }
 0x2c2   : > { %v960_v1 = vsel %vm833_vm5, %v955_v0, 0 }
 0x2c3   : > { %1827 = vmatpush3.bf16.xpose.msra.mxu1 %v960_v1 }
 0x2c4   : > { %1838 = vmatprep.subr.bf16.mxu1 %v2123_v55 }
 0x2d9   : > { %v738_v49 = vpop.xlane.xlu0 %737 }
 0x2da   : > { %v740_v50 = vmul.f32 0.03125, %v738_v49 }
 0x2dc   : > { %v741_v51 = vsub.f32 %v2357_v47, %v740_v50 }
 0x2de   : > { %v742_v52 = vmul.f32 %v741_v51, %v741_v51 }
 0x2e0   : > { %v743_v53 = vsel %vm735_vm3, %v742_v52, 0.0 }
 0x2e1   : > { %744 = vadd.xlane.f32.xlu0 %v743_v53 }
 0x2f7   : > { %1072 = vrot.lane.b32.xlu0 %v2377_v57, %s2126_s21 }
 0x36e   : > { %v745_v58 = vpop.xlane.xlu0 %744 }
 0x36f   : > { %v746_v59 = vmul.f32 0.03125, %v745_v58 }
 0x371   : > { %v747_v61 = vadd.f32 1e-05, %v746_v59 }
 0x372   : > { %v1073_v17 = vpop.permute.xlu0 %1072 }
 0x373   : > { %2005 = vrsqrt.f32 %v747_v61  ;;  %v1078_v18 = vsel %vm833_vm5, %v1073_v17, 0 }
 0x37d   : > { %v2006_v3 = vpop.eup %2005 }
 0x37e   : > { %v749_v4 = vmul.f32 %v2006_v3, %v741_v51 }
 0x380   : > { %v756_v6 = vmul.f32 %v754_v2, %v749_v4 }
 0x382   : > { %v763_v7 = vadd.f32 %v761_v5, %v756_v6 }
 0x384   : > { %v764_v8 = vpack.c.bf16 %v763_v7, %v763_v7 }
 0x386   : > { %1811 = vmatmul.mubr.msk.bf16.vlgmr.msra.gmra.mrb[0].mxu0 %vm735_vm3, %v764_v8 }
 0x387   : > { %1815 = vmatpush3.bf16.xpose.msra.mxu0 %v838_v9  ;;  %1816 = vmatprep.mubr.msk.bf16.mxu0 %vm2124_vm4, %v2123_v55 }
 0x388   : > { %1820 = vmatprep.subr.bf16.mxu0 %v2123_v55 }
 0x459   : > { %v825_v11 = vpop.f32.mrb[0].mxu0 }
 0x45a   : > { %v826_v12 = vadd.f32 %v1723_v10, %v825_v11  ;;  %v1812_v13 = vpop.f32.mrb[1].mxu0 }
 0x45b   : > { %v828_v14 = vpop.f32.mrb[2].mxu0 }
 0x45c   : > { %v831_v15 = vpack.c.bf16 %v826_v12, %v826_v12  ;;  %v1813_v16 = vpop.f32.mrb[3].mxu0 }
 0x45e   : > { %951 = vrot.lane.b32.xlu1 %v831_v15, %s2125_s20  ;;  %1817 = vmatmul.mubr.msk.bf16.vlgmr.msra.gmra.mrb[4].mxu0 %vm833_vm5, %v831_v15  ;;  %s2646_s20 = sld [smem:[#allocation23_spill]] }
 0x45f   : > { %1822 = vmatprep.mubr.msk.bf16.mxu0 %vm2124_vm4, %v2123_v55 }
 0x462   : > { %1069 = vrot.lane.b32.xlu1 %v831_v15, %s2126_s21  ;;  %s2133_s21 = smov 16  }
 0x466   : > { %1190 = vrot.lane.b32.xlu1 %v2377_v57, %s2127_s26 }
 0x46a   : > { %1187 = vrot.lane.b32.xlu1 %v831_v15, %s2127_s26  ;;  %s2648_s26 = sld [smem:[#allocation8_spill]] }
 0x4d0   : > { %v952_v19 = vpop.permute.xlu1 %951 }
 0x4d1   : > { %1829 = vmatmul.mubr.msk.bf16.vlgmr.msra.gmra.mrb[0].mxu1 %vm833_vm5, %v952_v19 }
 0x4d2   : > { %1839 = vmatpush3.bf16.xpose.msra.mxu1 %v1078_v18  ;;  %1840 = vmatprep.mubr.msk.bf16.mxu1 %vm2124_vm4, %v2123_v55 }
 0x4d3   : > { %1850 = vmatprep.subr.bf16.mxu1 %v2123_v55 }
 0x4d4   : > { %v1070_v20 = vpop.permute.xlu1 %1069 }
 0x4d8   : > { %v1191_v21 = vpop.permute.xlu1 %1190 }
 0x4d9   : > { %v1196_v22 = vsel %vm833_vm5, %v1191_v21, 0  ;;  %1841 = vmatmul.mubr.msk.bf16.vlgmr.msra.gmra.mrb[4].mxu1 %vm833_vm5, %v1070_v20 }
 0x4da   : > { %1851 = vmatpush3.bf16.xpose.msra.mxu1 %v1196_v22  ;;  %1852 = vmatprep.mubr.msk.bf16.mxu1 %vm2124_vm4, %v2123_v55 }
 0x4db   : > { %1862 = vmatprep.subr.bf16.mxu1 %v2123_v55 }
 0x4dc   : > { %v1188_v23 = vpop.permute.xlu1 %1187 }
 0x4e1   : > { %1853 = vmatmul.mubr.msk.bf16.vlgmr.msra.gmra.mrb[8].mxu1 %vm833_vm5, %v1188_v23 }
 0x4e2   : > { %1866 = vmatprep.mubr.msk.bf16.mxu1 %vm2124_vm4, %v2123_v55 }
 0x531   : > { %v874_v24 = vpop.f32.mrb[4].mxu0 }
 0x532   : > { %v880_v26 = vmul.f32 0.35355338, %v874_v24  ;;  %v1818_v27 = vpop.f32.mrb[5].mxu0 }
 0x533   : > { %v877_v28 = vpop.f32.mrb[6].mxu0 }
 0x534   : > { %v1819_v29 = vpop.f32.mrb[7].mxu0  ;;  %v887_v30 = vadd.f32 %v1728_v25, %v880_v26 }
 0x536   : > { %v889_v31 = vsel %vm888_vm6, %v887_v30, -inf }
 0x537   : > { %890 = vmax.xlane.f32.xlu1 %v889_v31 }
 0x5a4   : > { %v996_v32 = vpop.f32.mrb[0].mxu1 }
 0x5a5   : > { %v1002_v33 = vmul.f32 0.35355338, %v996_v32  ;;  %v1830_v34 = vpop.f32.mrb[1].mxu1 }
 0x5a6   : > { %v999_v35 = vpop.f32.mrb[2].mxu1 }
 0x5a7   : > { %v1831_v36 = vpop.f32.mrb[3].mxu1  ;;  %v1003_v37 = vadd.f32 %v1728_v25, %v1002_v33 }
 0x5a9   : > { %v1004_v38 = vsel %vm888_vm6, %v1003_v37, -inf }
 0x5aa   : > { %1005 = vmax.xlane.f32.xlu0 %v1004_v38 }
 0x5ac   : > { %v1114_v39 = vpop.f32.mrb[4].mxu1 }
 0x5ad   : > { %v1120_v40 = vmul.f32 0.35355338, %v1114_v39  ;;  %v1842_v41 = vpop.f32.mrb[5].mxu1  ;;  %v1993_v39 = vld [vmem:[%s2595_s9] sm:$0xff]  }
 0x5ae   : > { %v1117_v42 = vpop.f32.mrb[6].mxu1  ;;  %1863 = vmatpush3.bf16.msra.mxu1 %v1993_v39 }
 0x5af   : > { %v1843_v43 = vpop.f32.mrb[7].mxu1  ;;  %v1121_v44 = vadd.f32 %v1728_v25, %v1120_v40  ;;  %v1994_v40 = vld [vmem:[%s2595_s9 + $0x8] sm:$0xff]   ;;  %1864 = vmatprep.subr.bf16.mxu1 %v2123_v55 }
 0x5b1   : > { %v1122_v45 = vsel %vm888_vm6, %v1121_v44, -inf }
 0x5b2   : > { %1123 = vmax.xlane.f32.xlu1 %v1122_v45  ;;  %1865 = vmatpush3.bf16.msra.mxu1 %v1994_v40 }
 0x5b3   : > { %1878 = vmatprep.subr.bf16.mxu1 %v2123_v55 }
 0x5b4   : > { %v1232_v46 = vpop.f32.mrb[8].mxu1 }
 0x5b5   : > { %v1238_v48 = vmul.f32 0.35355338, %v1232_v46  ;;  %v1854_v49 = vpop.f32.mrb[9].mxu1 }
 0x5b6   : > { %v1235_v50 = vpop.f32.mrb[10].mxu1 }
 0x5b7   : > { %v1855_v51 = vpop.f32.mrb[11].mxu1  ;;  %v1239_v52 = vadd.f32 %v1728_v25, %v1238_v48 }
 0x5b9   : > { %v1240_v53 = vsel %vm888_vm6, %v1239_v52, -inf }
 0x5ba   : > { %1241 = vmax.xlane.f32.xlu1 %v1240_v53 }
 0x5c4   : > { %v891_v54 = vpop.xlane.xlu1 %890 }
 0x5c5   : > { %v892_v56 = vsub.f32 %v887_v30, %v891_v54 }
 0x5c7   : > { %v893_v58 = vmul.f32 1.442695, %v892_v56  ;;  %v1736_v56 = vld [vmem:[%s2596_s10] ss:$0 sm:$0xff] }
 0x5c9   : > { %2007 = vpow2.f32 %v893_v58 }
 0x5d3   : > { %v2008_v59 = vpop.eup %2007 }
 0x5d4   : > { %v895_v60 = vsel %vm888_vm6, %v2008_v59, 0.0 }
 0x5d5   : > { %896 = vadd.xlane.f32.xlu0 %v895_v60 }
 0x637   : > { %v1006_v61 = vpop.xlane.xlu0 %1005 }
 0x638   : > { %v1007_v62 = vsub.f32 %v1003_v37, %v1006_v61 }
 0x63a   : > { %v1008_v63 = vmul.f32 1.442695, %v1007_v62 }
 0x63c   : > { %2009 = vpow2.f32 %v1008_v63 }
 0x63f   : > { %v1124_v2 = vpop.xlane.xlu1 %1123 }
 0x640   : > { %v1125_v3 = vsub.f32 %v1121_v44, %v1124_v2 }
 0x642   : > { %v1126_v4 = vmul.f32 1.442695, %v1125_v3 }
 0x644   : > { %2011 = vpow2.f32 %v1126_v4 }
 0x646   : > { %v2010_v5 = vpop.eup %2009 }
 0x647   : > { %v1010_v6 = vsel %vm888_vm6, %v2010_v5, 0.0  ;;  %v1242_v9 = vpop.xlane.xlu1 %1241 }
 0x648   : > { %1011 = vadd.xlane.f32.xlu1 %v1010_v6  ;;  %v1243_v0 = vsub.f32 %v1239_v52, %v1242_v9  ;;  %v1997_v9 = vld [vmem:[%s2601_s15] sm:$0xff]  }
 0x64a   : > { %v1244_v1 = vmul.f32 1.442695, %v1243_v0  ;;  %v1998_v0 = vld [vmem:[%s2601_s15 + $0x8] sm:$0xff]  }
 0x64c   : > { %2013 = vpow2.f32 %v1244_v1  ;;  %v1999_v1 = vld [vmem:[%s2601_s15 + $0x10] sm:$0xff]  }
 0x64e   : > { %v2012_v7 = vpop.eup %2011 }
 0x64f   : > { %v1128_v8 = vsel %vm888_vm6, %v2012_v7, 0.0 }
 0x650   : > { %1129 = vadd.xlane.f32.xlu0 %v1128_v8  ;;  %v1995_v8 = vld [vmem:[%s2599_s13] sm:$0xff]  }
 0x656   : > { %v2014_v10 = vpop.eup %2013 }
 0x657   : > { %v1246_v11 = vsel %vm888_vm6, %v2014_v10, 0.0 }
 0x659   : > { %1016 = vrot.lane.b32.xlu1 %v2377_v57, %s2128_s1  ;;  %s1606_s1 = sshll.u32 %s589_s28, 4  ;;  %s2530_s1 = int_to_ptr.vmem [resolvable:$true] %s1606_s1 }
 0x65a   : > { %s2025_s4 = scalar_lea.vmem %s2530_s1, 128 }
 0x65b   : > { %p2026_p1 = scmp.ne.s32.totalorder %s2530_s1, %s2025_s4 }
 0x65d   : > { %p2027_p2 = pnand %p2026_p1, %p2278_p3 }
 0x65f   : > { %p2028_p4 = pneg %p2027_p2 }
 0x662   : > { %v897_v12 = vpop.xlane.xlu0 %896 }
 0x663   : > { %2015 = vrcp.f32 %v897_v12  ;;  %v2002_v12 = vld [vmem:[%s2601_s15 + $0x28] sm:$0xff]  }
 0x666   : > { %902 = vrot.lane.b32.xlu0 %v2377_v57, %s2129_s17 }
 0x66a   : > { %1252 = vrot.lane.b32.xlu0 %v2377_v57, %s2130_s23 }
 0x66d   : > { %v2016_v14 = vpop.eup %2015 }
 0x66e   : > { %v899_v16 = vmul.f32 %v2016_v14, %v2008_v59 }
 0x670   : > { %v900_v18 = vpack.c.bf16 %v899_v16, %v899_v16 }
 0x67d   : > { %1247 = vadd.xlane.f32.xlu1 %v1246_v11  ;;  %v2001_v11 = vld [vmem:[%s2601_s15 + $0x20] sm:$0xff]  }
 0x68e   : > { %1134 = vrot.lane.b32.xlu1 %v2377_v57, %s2131_s19  ;;  %s2650_s19 = sld [smem:[#allocation25_spill]] }
 0x6d5   : > { %v1012_v13 = vpop.xlane.xlu1 %1011 }
 0x6d6   : > { %2017 = vrcp.f32 %v1012_v13 }
 0x6d9   : > { %v1017_v20 = vpop.permute.xlu1 %1016 }
 0x6dd   : > { %v1130_v15 = vpop.xlane.xlu0 %1129 }
 0x6de   : > { %2019 = vrcp.f32 %v1130_v15 }
 0x6e0   : > { %v2018_v19 = vpop.eup %2017 }
 0x6e1   : > { %v903_v17 = vpop.permute.xlu0 %902  ;;  %v1014_v57 = vmul.f32 %v2018_v19, %v2010_v5  ;;  %v1741_v19 = vld [vmem:[%s2598_s12] ss:$0 sm:$0xff] }
 0x6e2   : > { %1821 = vmatpush3.bf16.msra.mxu0 %v903_v17  ;;  %v1740_v17 = vld [vmem:[%s2597_s11] ss:$0 sm:$0xff] }
 0x6e3   : > { %1832 = vmatprep.subr.bf16.mxu0 %v2123_v55  ;;  %v1015_v21 = vpack.c.bf16 %v1014_v57, %v1014_v57 }
 0x6e5   : > { %1823 = vmatmul.mubr.msk.bf16.vlgmr.msra.gmra.mrb[8].mxu0 %vm888_vm6, %v900_v18  ;;  %v1253_v27 = vpop.permute.xlu0 %1252 }
 0x6e6   : > { %1833 = vmatpush3.bf16.msra.mxu0 %v1017_v20  ;;  %1834 = vmatprep.mubr.msk.bf16.mxu0 %vm2124_vm4, %v2123_v55 }
 0x6e7   : > { %1844 = vmatprep.subr.bf16.mxu0 %v2123_v55 }
 0x6e8   : > { %v2020_v22 = vpop.eup %2019 }
 0x6e9   : > { %v1132_v24 = vmul.f32 %v2020_v22, %v2012_v7  ;;  %v2003_v22 = vld [vmem:[%s2601_s15 + $0x30] sm:$0xff]  }
 0x6eb   : > { %v1133_v26 = vpack.c.bf16 %v1132_v24, %v1132_v24  ;;  %v734_v24 = vld [vmem:[%s2333_s14] sm:$0xff] }
 0x6ed   : > { %1835 = vmatmul.mubr.msk.bf16.vlgmr.msra.gmra.mrb[12].mxu0 %vm888_vm6, %v1015_v21 }
 0x6ee   : > { %1846 = vmatprep.mubr.msk.bf16.mxu0 %vm2124_vm4, %v2123_v55 }
 0x70a   : > { %v1248_v23 = vpop.xlane.xlu1 %1247 }
 0x70b   : > { %2021 = vrcp.f32 %v1248_v23  ;;  %v2004_v23 = vld [vmem:[%s2601_s15 + $0x38] sm:$0xff]  }
 0x70e   : > { %v1135_v25 = vpop.permute.xlu1 %1134 }
 0x70f   : > { %1845 = vmatpush3.bf16.msra.mxu0 %v1135_v25  ;;  %v2135_v25 = vmov 0  }
 0x710   : > { %1856 = vmatprep.subr.bf16.mxu0 %v2123_v55  ;;  %1990 = vset.pattern.permute.xlu0 %v2135_v25 }
 0x712   : > { %1847 = vmatmul.mubr.msk.bf16.vlgmr.msra.gmra.mrb[16].mxu0 %vm888_vm6, %v1133_v26  ;;  %v1742_v26 = vld [vmem:[%s2646_s20] ss:$0 sm:$0xff]  ;;  %s2029_s20 = sshll.u32 %s2136_s29, 4  ;;  %s2030_s20 = int_to_ptr.vmem [resolvable:$false] %s2029_s20 }
 0x713   : > { %1857 = vmatpush3.bf16.msra.mxu0 %v1253_v27  ;;  %1858 = vmatprep.mubr.msk.bf16.mxu0 %vm2124_vm4, %v2123_v55  ;;  %p2032_p5 = scmp.lt.s32.totalorder %s2530_s1, %s2030_s20 }
 0x714   : > { %1870 = vmatprep.subr.bf16.mxu0 %v2123_v55 }
 0x715   : > { %v2022_v28 = vpop.eup %2021 }
 0x716   : > { %v1250_v29 = vmul.f32 %v2022_v28, %v2014_v10  ;;  %v2000_v10 = vld [vmem:[%s2601_s15 + $0x18] sm:$0xff]  }
 0x718   : > { %v1251_v30 = vpack.c.bf16 %v1250_v29, %v1250_v29 }
 0x71a   : > { %1859 = vmatmul.mubr.msk.bf16.vlgmr.msra.gmra.mrb[20].mxu0 %vm888_vm6, %v1251_v30 }
 0x71b   : > { %1874 = vmatprep.mubr.msk.bf16.mxu0 %vm2124_vm4, %v2123_v55  ;;  %1871 = vmatpush3.bf16.msra.mxu0 %v1995_v8 }
 0x71c   : > { %1872 = vmatprep.subr.bf16.mxu0 %v2123_v55 }
 0x7b8   : > { %v942_v31 = vpop.f32.mrb[8].mxu0 }
 0x7b9   : > { %948 = vst.msk [vmem:[#allocation3] sm:$0xff] %vm833_vm5, %v942_v31  ;;  %v1824_v32 = vpop.f32.mrb[9].mxu0 }
 0x7ba   : > { %v945_v33 = vpop.f32.mrb[10].mxu0 }
 0x7bb   : > { %v1825_v34 = vpop.f32.mrb[11].mxu0  ;;  %v1746_v33 = vld [vmem:[%s2647_s25] ss:$0 sm:$0xff] }
 0x7c0   : > { %v1056_v35 = vpop.f32.mrb[12].mxu0 }
 0x7c1   : > { %1063 = vrot.lane.b32.xlu1 %v1056_v35, %s2132_s18  ;;  %v1836_v36 = vpop.f32.mrb[13].mxu0 }
 0x7c2   : > { %v1059_v37 = vpop.f32.mrb[14].mxu0 }
 0x7c3   : > { %v1837_v38 = vpop.f32.mrb[15].mxu0 }
 0x7e5   : > { %v1174_v41 = vpop.f32.mrb[16].mxu0 }
 0x7e6   : > { %1181 = vrot.lane.b32.xlu0 %v1174_v41, %s2133_s21  ;;  %v1848_v42 = vpop.f32.mrb[17].mxu0  ;;  %s1756_s21 = sshll.u32 %s2645_s24, 1 }
 0x7e7   : > { %v1177_v43 = vpop.f32.mrb[18].mxu0  ;;  %s1602_s0 = sadd.s32 %s2103_s27, %s1756_s21  ;;  %s2651_s27 = sand.u32 1, %s2648_s26  }
 0x7e8   : > { %v1849_v44 = vpop.f32.mrb[19].mxu0  ;;  %s1757_s22 = sshll.u32 %s1602_s0, 7  ;;  %s1591_s24 = scalar_lea.sflag [#allocation5], %s2651_s27 }
 0x7e9   : > { %s2528_s18 = scalar_lea.hbm %s2650_s19, %s1757_s22  ;;  %s2031_s21 = scalar_lea.vmem %s2030_s20, 256 }
 0x7ea   : > { %p2033_p6 = scmp.lt.s32.totalorder %s2031_s21, %s2025_s4 }
 0x7ec   : > { %p2034_p7 = por %p2033_p6, %p2032_p5 }
 0x7ed   : > { %v1292_v45 = vpop.f32.mrb[20].mxu0 }
 0x7ee   : > { %1299 = vrot.lane.b32.xlu1 %v1292_v45, %s2134_s3  ;;  %v1860_v46 = vpop.f32.mrb[21].mxu0  ;;  %p2035_p9 = pnand %p2034_p7, %p2028_p4 }
 0x7ef   : > { %v1295_v48 = vpop.f32.mrb[22].mxu0 }
 0x7f0   : > { %v1861_v49 = vpop.f32.mrb[23].mxu0 }
 0x833   : > { %v1064_v50 = vpop.permute.xlu1 %1063 }
 0x834   : > { %1067 = vst.msk [vmem:[#allocation3] sm:$0xff] %vm1066_vm7, %v1064_v50 }
 0x858   : > { %v1182_v51 = vpop.permute.xlu0 %1181 }
 0x859   : > { %1185 = vst.msk [vmem:[#allocation3] sm:$0xff] %vm1184_vm8, %v1182_v51 }
 0x860   : > { %v1300_v52 = vpop.permute.xlu1 %1299 }
 0x861   : > { %1303 = vst.msk [vmem:[#allocation3] sm:$0xff] %vm1302_vm9, %v1300_v52 }
 0x868   : > { %v1304_v53 = vld [vmem:[#allocation3] sm:$0xff] }
 0x869   : > { %v1305_v54 = vpack.c.bf16 %v1304_v53, %v1304_v53 }
 0x86b   : > { %1867 = vmatmul.mubr.msk.bf16.vlgmr.msra.gmra.mrb[12].mxu1 %vm735_vm3, %v1305_v54 }
 0x86c   : > { %1894 = vmatprep.mubr.msk.bf16.mxu1 %vm2124_vm4, %v2123_v55  ;;  %1879 = vmatpush3.bf16.msra.mxu1 %v1997_v9 }
 0x86d   : > { %1880 = vmatprep.subr.bf16.mxu1 %v2123_v55 }
 0x870   : > { %1881 = vmatpush3.bf16.msra.mxu1 %v1998_v0 }
 0x871   : > { %1882 = vmatprep.subr.bf16.mxu1 %v2123_v55 }
 0x874   : > { %1883 = vmatpush3.bf16.msra.mxu1 %v1999_v1 }
 0x875   : > { %1884 = vmatprep.subr.bf16.mxu1 %v2123_v55 }
 0x878   : > { %1885 = vmatpush3.bf16.msra.mxu1 %v2000_v10 }
 0x879   : > { %1886 = vmatprep.subr.bf16.mxu1 %v2123_v55 }
 0x87c   : > { %1887 = vmatpush3.bf16.msra.mxu1 %v2001_v11 }
 0x87d   : > { %1888 = vmatprep.subr.bf16.mxu1 %v2123_v55 }
 0x880   : > { %1889 = vmatpush3.bf16.msra.mxu1 %v2002_v12 }
 0x881   : > { %1890 = vmatprep.subr.bf16.mxu1 %v2123_v55 }
 0x884   : > { %1891 = vmatpush3.bf16.msra.mxu1 %v2003_v22 }
 0x885   : > { %1892 = vmatprep.subr.bf16.mxu1 %v2123_v55 }
 0x888   : > { %1893 = vmatpush3.bf16.msra.mxu1 %v2004_v23 }
 0x93e   : > { %v1366_v58 = vpop.f32.mrb[12].mxu1 }
 0x93f   : > { %v1367_v59 = vadd.f32 %v1736_v56, %v1366_v58  ;;  %v1868_v60 = vpop.f32.mrb[13].mxu1 }
 0x940   : > { %v1369_v61 = vpop.f32.mrb[14].mxu1 }
 0x941   : > { %v2462_v62 = vadd.f32 %v1367_v59, %v2357_v47  ;;  %v1869_v63 = vpop.f32.mrb[15].mxu1  ;;  %v1996_v47 = vld [vmem:[%s2599_s13 + $0x8] sm:$0xff]  }
 0x942   : > { %1873 = vmatpush3.bf16.msra.mxu0 %v1996_v47 }
 0x943   : > { %v1375_v2 = vsel %vm735_vm3, %v2462_v62, 0.0 }
 0x944   : > { %1376 = vadd.xlane.f32.xlu0 %v1375_v2 }
 0x95a   : > { %1585 = vperm.xlu0 %1990, %v734_v24  }
 0x9d1   : > { %v1377_v3 = vpop.xlane.xlu0 %1376 }
 0x9d2   : > { %v1378_v4 = vmul.f32 0.03125, %v1377_v3 }
 0x9d4   : > { %v1379_v5 = vsub.f32 %v2462_v62, %v1378_v4 }
 0x9d6   : > { %v1380_v6 = vmul.f32 %v1379_v5, %v1379_v5 }
 0x9d8   : > { %v1381_v7 = vsel %vm735_vm3, %v1380_v6, 0.0 }
 0x9d9   : > { %1382 = vadd.xlane.f32.xlu1 %v1381_v7  ;;  %v1586_v38 = vpop.permute.xlu0 %1585 }
 0xa66   : > { %v1383_v13 = vpop.xlane.xlu1 %1382 }
 0xa67   : > { %v1384_v14 = vmul.f32 0.03125, %v1383_v13 }
 0xa69   : > { %v1385_v15 = vadd.f32 1e-05, %v1384_v14 }
 0xa6b   : > { %2023 = vrsqrt.f32 %v1385_v15 }
 0xa75   : > { %v2024_v16 = vpop.eup %2023 }
 0xa76   : > { %v1387_v18 = vmul.f32 %v2024_v16, %v1379_v5 }
 0xa78   : > { %v1394_v20 = vmul.f32 %v1740_v17, %v1387_v18 }
 0xa7a   : > { %v1401_v57 = vadd.f32 %v1741_v19, %v1394_v20 }
 0xa7c   : > { %v1402_v21 = vpack.c.bf16 %v1401_v57, %v1401_v57 }
 0xa7e   : > { %1875 = vmatmul.mubr.msk.bf16.vlgmr.msra.gmra.mrb[24].mxu0 %vm735_vm3, %v1402_v21 }
 0xb51   : > { %v1463_v27 = vpop.f32.mrb[24].mxu0 }
 0xb52   : > { %v1464_v28 = vadd.f32 %v1742_v26, %v1463_v27  ;;  %v1876_v29 = vpop.f32.mrb[25].mxu0 }
 0xb53   : > { %v1466_v55 = vpop.f32.mrb[26].mxu0 }
 0xb54   : > { %v1469_v30 = vmax.f32 %v1464_v28, 0.0  ;;  %v1877_v31 = vpop.f32.mrb[27].mxu0 }
 0xb56   : > { %v1470_v32 = vpack.c.bf16 %v1469_v30, %v1469_v30 }
 0xb58   : > { %1895 = vmatmul.mubr.bf16.vlgmr.msra.gmra.mrb[16].mxu1 %v1470_v32 }
 0xc2b   : > { %v1576_v34 = vpop.f32.mrb[16].mxu1 }
 0xc2c   : > { %v1577_v35 = vadd.f32 %v1746_v33, %v1576_v34  ;;  %v1896_v36 = vpop.f32.mrb[17].mxu1 }
 0xc2d   : > { %v1579_v37 = vpop.f32.mrb[18].mxu1 }
 0xc2e   : > { %v1897_v39 = vpop.f32.mrb[19].mxu1  ;;  %v1582_v40 = vadd.f32 %v1577_v35, %v2462_v62 }
 0xc30   : > { %v1588_v41 = vmul.f32 %v1586_v38, %v1582_v40 }
 0xc32   : > { %1589 = vst.msk [vmem:[%s589_s28] sm:$0xff] %vm735_vm3, %v1588_v41 }
 0xc33   : > { %2038 = shalt.err (!%p2035_p9)
}
 0xc34   : > { %s2039_s28 = scalar_lea.hbm %s2528_s18, 128  ;;  %s2043_s14 = scalar_lea.hbm %s2650_s19, 512 }
 0xc35   : > { %p2040_p10 = scmp.ne.s32.totalorder %s2528_s18, %s2039_s28  ;;  %p2044_p13 = scmp.lt.u32.totalorder %s2528_s18, %s2650_s19 }
 0xc36   : > { %p2045_p0 = scmp.lt.u32.totalorder %s2043_s14, %s2039_s28  ;;  %p2047_p2 = scmp.lt.u32.totalorder %s2039_s28, %s2528_s18 }
 0xc37   : > { %p2041_p11 = pnand %p2040_p10, %p2278_p3 }
 0xc38   : > { %p2046_p1 = por %p2045_p0, %p2044_p13 }
 0xc39   : > { %p2042_p12 = pneg %p2041_p11 }
 0xc3a   : > { %p2048_p4 = por %p2047_p2, %p2046_p1 }
 0xc3c   : > { %p2049_p5 = pnand %p2048_p4, %p2042_p12 }
 0xc3e   : > { %2052 = shalt.err (!%p2049_p5)
}
 0xc3f   : > { %1898 = dma.vmem_to_hbm [thread:$0]  (%p2278_p3), %s2530_s1, 128, %s2528_s18, %s1591_s24  }
 0xc40 PF: > { %s2652_s0 = sld [smem:[#allocation13_spill]]  ;;  %s2653_s22 = sld [smem:[#allocation7_spill]] }
 0xc46   : > { %p1904_p6 = scmp.ge.s32.totalorder %s2652_s0, 2  ;;  %s1618_s23 = sand.u32 1, %s2653_s22  }
 0xc47   : > { %s1619_s27 = scalar_lea.sflag [#allocation5], %s1618_s23 }
 0xc48   : > { %p1901_p7 = pnand %p1904_p6, %p2287_p8 }
 0xc4a   : > { %2086 = dma.done.wait (!%p1901_p7), %s1619_s27, 128  }
 0xc4b   : > { %2088 = vsyncadd (!%p1901_p7), %s1619_s27, 4294967168  ;;  %s30_s30 = sadd.s32 1, %s2652_s0   ;;  %s2655_s24 = sld [smem:[#allocation8_spill]] }
 0xc4c   : > { %p27_p9 = scmp.ge.s32.totalorder %s30_s30, 6   ;;  %s2656_s25 = sld [smem:[#allocation9_spill]] }
 0xc4d   : > { %s2657_s26 = sld [smem:[#allocation18_spill]]  ;;  %s2658_s27 = sld [smem:[#allocation11_spill]] }
 0xc4e   : > { %s2659_s28 = sld [smem:[#allocation12_spill]]  ;;  %s2660_s29 = sld [smem:[#allocation14_spill]] }
 0xc4f   : > { %s2661_s0 = sld [smem:[#allocation16_spill]]  ;;  %29 = sbr.rel (!%p27_p9) target bundleno = 13 (0xd), region = 134 }
 0xc56   :  { %1624 = vsyncpa [#allocation5], 1 }
 0xc57   :  { %1626 = vsyncpa [#allocation5 + $0x1], 1 }

</bundles_post_ra>
